<compile_context>
chip_gen: v7x
topology: tpu7x:2x2x1
jax: 0.10.0
libtpu: 0.0.40
codegen_flags: <defaults>
</compile_context>

<pallas_src>
import functools

import numpy as np
import jax
import jax.numpy as jnp
from jax import lax
from jax.experimental import pallas as pl
from jax.experimental.pallas import tpu as pltpu


def _round_up(x, m):
    return ((x + m - 1) // m) * m


# --------------------- host-precomputed pooling constants --------------------

@functools.lru_cache(maxsize=None)
def _pool_constants(h, w):
    """Stacked 2x2 max-pool selectors (with halo folding) + interior masks."""
    h2, w2 = h // 2, w // 2
    h3, w3 = h // 4, w // 4
    wp2, wp3 = w2 + 2, w3 + 2          # padded widths of the layer-2/3 inputs
    L2, L3 = h2 * wp2, h3 * wp3        # "wide" conv output lengths
    # Padded-slab row counts: big enough that every shifted slice
    # [off : off + L] stays in range (extra rows are zero), rounded to 8.
    Q2 = _round_up((h2 + 2) * wp2 + 2, 8)
    Q3 = _round_up((h3 + 2) * wp3 + 2, 8)

    # P1: (4*Q2, h*w).  For pool shift s=(a,b), row s*Q2 + q selects conv1
    # output pixel (2i+a, 2j+b), where q = (i+1)*wp2 + (j+1) is the
    # halo-padded row-major destination of pooled pixel (i, j).
    P1 = np.zeros((4 * Q2, h * w), np.float32)
    m1 = np.zeros((Q2, 1), np.float32)
    for a in range(2):
        for b in range(2):
            s = 2 * a + b
            for i in range(h2):
                for j in range(w2):
                    q = (i + 1) * wp2 + (j + 1)
                    P1[s * Q2 + q, (2 * i + a) * w + (2 * j + b)] = 1.0
    for i in range(h2):
        for j in range(w2):
            m1[(i + 1) * wp2 + (j + 1), 0] = 1.0

    # P2: (4*Q3, L2).  Input is conv2's "wide" (h2 x wp2) row-major output;
    # only valid columns (< w2) are ever selected.
    P2 = np.zeros((4 * Q3, L2), np.float32)
    m2 = np.zeros((Q3, 1), np.float32)
    for a in range(2):
        for b in range(2):
            s = 2 * a + b
            for i in range(h3):
                for j in range(w3):
                    q = (i + 1) * wp3 + (j + 1)
                    P2[s * Q3 + q, (2 * i + a) * wp2 + (2 * j + b)] = 1.0
    for i in range(h3):
        for j in range(w3):
            m2[(i + 1) * wp3 + (j + 1), 0] = 1.0

    return P1, m1, P2, m2, Q2, Q3, L2, L3, wp2, wp3


# ------------------------------ fused kernel ---------------------------------

def _make_encoder_kernel(B, ch, Q2, Q3, L2, L3, wp2, wp3):
    off2 = [di * wp2 + dj for di in range(3) for dj in range(3)]
    off3 = [di * wp3 + dj for di in range(3) for dj in range(3)]
    f32 = jnp.float32

    def kernel(x_ref, w1_ref, p1_ref, b1_ref, w2_ref, p2_ref, b2_ref,
               w3_ref, b3_ref, out_ref, a2_sc, a3_sc):
        for b in range(B):                      # B images per grid step
            # ---- conv1 (5x5, pad 2): host-side im2col -> one MXU matmul ----
            y1 = jnp.dot(x_ref[b], w1_ref[...],
                         preferred_element_type=f32)            # (h*w, ch)

            # ---- pool1: ONE stacked selector matmul; output lands directly
            #      on the halo-padded (h2+2, w2+2) row-major grid.  Bias slab
            #      is pre-masked, so halo/extra rows stay exactly 0 after ReLU.
            p4 = jnp.dot(p1_ref[...], y1, preferred_element_type=f32)  # (4*Q2, ch)
            pm = jnp.maximum(jnp.maximum(p4[0:Q2], p4[Q2:2 * Q2]),
                             jnp.maximum(p4[2 * Q2:3 * Q2], p4[3 * Q2:4 * Q2]))
            a2_sc[...] = jnp.maximum(pm + b1_ref[...], 0.0)            # (Q2, ch)

            # ---- conv2 (3x3, pad 1): 9 shifted-slice matmuls over the padded
            #      row-major slab (wrap-around rows are garbage; the pool-2
            #      selector never reads them).
            y2 = jnp.dot(a2_sc[off2[0]:off2[0] + L2, :], w2_ref[0:ch, :],
                         preferred_element_type=f32)
            for t in range(1, 9):
                o = off2[t]
                y2 = y2 + jnp.dot(a2_sc[o:o + L2, :],
                                  w2_ref[t * ch:(t + 1) * ch, :],
                                  preferred_element_type=f32)          # (L2, ch)

            # ---- pool2: same stacked-selector scheme -> padded layer-3 slab
            q4 = jnp.dot(p2_ref[...], y2, preferred_element_type=f32)  # (4*Q3, ch)
            qm = jnp.maximum(jnp.maximum(q4[0:Q3], q4[Q3:2 * Q3]),
                             jnp.maximum(q4[2 * Q3:3 * Q3], q4[3 * Q3:4 * Q3]))
            a3_sc[...] = jnp.maximum(qm + b2_ref[...], 0.0)            # (Q3, ch)

            # ---- conv3 (3x3, pad 1, Cout=1): VPU multiply + lane reduce ----
            acc = a3_sc[off3[0]:off3[0] + L3, :] * w3_ref[0:1, :]
            for t in range(1, 9):
                o = off3[t]
                acc = acc + a3_sc[o:o + L3, :] * w3_ref[t:t + 1, :]    # (L3, ch)
            y3 = jnp.sum(acc, axis=-1, keepdims=True) + b3_ref[0]      # (L3, 1)
            out_ref[b] = jnp.maximum(y3, 0.0)

    return kernel


# ------------------------------ JAX wrapper ----------------------------------

def _flatten_conv1_w(w_oihw, k_pad):
    # (Cout, Cin, KH, KW) -> (KH*KW*Cin, Cout), zero-padded to k_pad rows,
    # matching the wrapper im2col column order (di, dj, c).
    cout, cin_, kh, kw = w_oihw.shape
    wf = jnp.transpose(w_oihw, (2, 3, 1, 0)).reshape(kh * kw * cin_, cout)
    return jnp.pad(wf, ((0, k_pad - kh * kw * cin_), (0, 0)))


@jax.jit
def encoder_forward(x_nchw, params):
    (w1, b1), (w2, b2), (w3, b3) = params
    n, cin, h, w = x_nchw.shape
    ch = w1.shape[0]
    assert h % 4 == 0 and w % 4 == 0, "need H, W divisible by 4"
    h3s, w3s = h // 4, w // 4

    P1, m1, P2, m2, Q2, Q3, L2, L3, wp2, wp3 = _pool_constants(h, w)
    k1p = _round_up(25 * cin, 128)

    # Layer-1 im2col in the wrapper (layout plumbing): lane-dense (last dim
    # = k1p = 128) operand so conv1 is a single clean MXU matmul in-kernel.
    x = jnp.transpose(x_nchw, (0, 2, 3, 1))                      # NHWC
    xp = jnp.pad(x, ((0, 0), (2, 2), (2, 2), (0, 0)))
    cols = jnp.concatenate(
        [xp[:, di:di + h, dj:dj + w, :] for di in range(5) for dj in range(5)],
        axis=-1).reshape(n, h * w, 25 * cin)
    x_cols = jnp.pad(cols, ((0, 0), (0, 0), (0, k1p - 25 * cin)))

    # Weights / biases in kernel-friendly layouts.
    w1f = _flatten_conv1_w(w1, k1p)                              # (k1p, ch)
    w2s = jnp.transpose(w2, (2, 3, 1, 0)).reshape(9 * ch, ch)    # (9*ch, ch)
    w3r = jnp.transpose(w3[0], (1, 2, 0)).reshape(9, ch)         # (9, ch)
    b1slab = jnp.asarray(m1) * b1[None, :]                       # (Q2, ch), 0 at halos
    b2slab = jnp.asarray(m2) * b2[None, :]                       # (Q3, ch), 0 at halos

    # Grid: at least 2 steps (both v7x TensorCores), B images per step to
    # amortize per-step overhead; input block capped at ~4 MiB so the
    # double-buffered pipeline fits comfortably in v7x's 64 MiB VMEM.
    max_b = max(1, (4 << 20) // (h * w * k1p * 4))
    min_steps = max(2 if n >= 2 else 1, -(-n // max_b))
    steps = n
    for s in range(min_steps, n + 1):
        if n % s == 0:
            steps = s
            break
    B = n // steps

    kernel = _make_encoder_kernel(B, ch, Q2, Q3, L2, L3, wp2, wp3)

    out = pl.pallas_call(
        kernel,
        out_shape=jax.ShapeDtypeStruct((n, L3, 1), jnp.float32),
        grid=(steps,),
        in_specs=[
            pl.BlockSpec((B, h * w, k1p), lambda i: (i, 0, 0)),   # im2col'd x
            pl.BlockSpec((k1p, ch), lambda i: (0, 0)),            # w1 (resident)
            pl.BlockSpec((4 * Q2, h * w), lambda i: (0, 0)),      # pool1 selector
            pl.BlockSpec((Q2, ch), lambda i: (0, 0)),             # masked b1 slab
            pl.BlockSpec((9 * ch, ch), lambda i: (0, 0)),         # w2 blocks
            pl.BlockSpec((4 * Q3, L2), lambda i: (0, 0)),         # pool2 selector
            pl.BlockSpec((Q3, ch), lambda i: (0, 0)),             # masked b2 slab
            pl.BlockSpec((9, ch), lambda i: (0, 0)),              # w3 rows
            pl.BlockSpec(memory_space=pltpu.MemorySpace.SMEM),    # b3 scalar
        ],
        out_specs=pl.BlockSpec((B, L3, 1), lambda i: (i, 0, 0)),
        scratch_shapes=[
            pltpu.VMEM((Q2, ch), jnp.float32),   # halo-padded pooled act (L2 input)
            pltpu.VMEM((Q3, ch), jnp.float32),   # halo-padded pooled act (L3 input)
        ],
        compiler_params=pltpu.CompilerParams(
            dimension_semantics=("parallel",),
        ),
    )(x_cols, w1f, jnp.asarray(P1), b1slab, w2s, jnp.asarray(P2), b2slab,
      w3r, b3.reshape(1))

    # Valid conv3 outputs live at wide-grid columns j < W/4; drop the rest.
    y = out[:, :, 0].reshape(n, h3s, wp3)[:, :, :w3s]
    return y[:, None, :, :]                                      # (N, 1, H/4, W/4)


# ------------------------------ reference ------------------------------------

def reference_forward(x_nchw, params):
    def conv(x, w, b, pad):
        y = lax.conv_general_dilated(
            x, w, (1, 1), [(pad, pad), (pad, pad)],
            dimension_numbers=("NCHW", "OIHW", "NCHW"))
        return y + b[None, :, None, None]

    def pool(x):
        return lax.reduce_window(x, -jnp.inf, lax.max,
                                 (1, 1, 2, 2), (1, 1, 2, 2), "VALID")

    (w1, b1), (w2, b2), (w3, b3) = params
    x = jax.nn.relu(pool(conv(x_nchw, w1, b1, 2)))
    x = jax.nn.relu(pool(conv(x, w2, b2, 1)))
    x = jax.nn.relu(conv(x, w3, b3, 1))
    return x


# ------------------------------ params / main --------------------------------

def init_params(key, in_chan, hidden_chan):
    def conv_init(k, cout, cin, kh, kw):
        k1, k2 = jax.random.split(k)
        fan_in = cin * kh * kw
        bound = 1.0 / (fan_in ** 0.5)
        w = jax.random.uniform(k1, (cout, cin, kh, kw), jnp.float32, -bound, bound)
        b = jax.random.uniform(k2, (cout,), jnp.float32, -bound, bound)
        return w, b

    k1, k2, k3 = jax.random.split(key, 3)
    return (conv_init(k1, hidden_chan, in_chan, 5, 5),
            conv_init(k2, hidden_chan, hidden_chan, 3, 3),
            conv_init(k3, 1, hidden_chan, 3, 3))


if __name__ == "__main__":
    key = jax.random.PRNGKey(0)
    kx, kp = jax.random.split(key)

    batch, in_chan, hidden_chan, spatial = 2, 4, 8, 16
    x = jax.random.normal(kx, (batch, in_chan, spatial, spatial), jnp.float32)
    params = init_params(kp, in_chan, hidden_chan)

    out = jax.block_until_ready(encoder_forward(x, params))
    ref = jax.block_until_ready(reference_forward(x, params))

    assert out.shape == (batch, 1, spatial // 4, spatial // 4), out.shape
    assert jnp.allclose(out, ref, atol=2e-4, rtol=2e-4), float(
        jnp.max(jnp.abs(out - ref)))

    print("KERNEL_OK")
</pallas_src>

<mosaic_0001>
module attributes {stable_mosaic.version = 11 : i64} {
  func.func @kernel(%arg0: i32, %arg1: memref<1x256x128xf32, #tpu.memory_space<vmem>>, %arg2: memref<128x8xf32, #tpu.memory_space<vmem>>, %arg3: memref<416x256xf32, #tpu.memory_space<vmem>>, %arg4: memref<104x8xf32, #tpu.memory_space<vmem>>, %arg5: memref<72x8xf32, #tpu.memory_space<vmem>>, %arg6: memref<160x80xf32, #tpu.memory_space<vmem>>, %arg7: memref<40x8xf32, #tpu.memory_space<vmem>>, %arg8: memref<9x8xf32, #tpu.memory_space<vmem>>, %arg9: memref<1xf32, #tpu.memory_space<smem>>, %arg10: memref<1x24x1xf32, #tpu.memory_space<vmem>>, %arg11: memref<104x8xf32, #tpu.memory_space<vmem>>, %arg12: memref<40x8xf32, #tpu.memory_space<vmem>>) attributes {dimension_semantics = [#tpu.dimension_semantics<parallel>], iteration_bounds = array<i64: 2>, scalar_prefetch = 0 : i64, scratch_operands = 2 : i64, tpu.core_type = #tpu.core_type<tc>, window_params = [{transform_indices = @transform_0, window_bounds = array<i64: 1, 256, 128>}, {pipeline_mode = #tpu.pipeline_mode<synchronous>, transform_indices = @transform_1, window_bounds = array<i64: 128, 8>}, {pipeline_mode = #tpu.pipeline_mode<synchronous>, transform_indices = @transform_2, window_bounds = array<i64: 416, 256>}, {pipeline_mode = #tpu.pipeline_mode<synchronous>, transform_indices = @transform_3, window_bounds = array<i64: 104, 8>}, {pipeline_mode = #tpu.pipeline_mode<synchronous>, transform_indices = @transform_4, window_bounds = array<i64: 72, 8>}, {pipeline_mode = #tpu.pipeline_mode<synchronous>, transform_indices = @transform_5, window_bounds = array<i64: 160, 80>}, {pipeline_mode = #tpu.pipeline_mode<synchronous>, transform_indices = @transform_6, window_bounds = array<i64: 40, 8>}, {pipeline_mode = #tpu.pipeline_mode<synchronous>, transform_indices = @transform_7, window_bounds = array<i64: 9, 8>}, {transform_indices = @transform_8, window_bounds = array<i64: 1>}, {transform_indices = @transform_9, window_bounds = array<i64: 1, 24, 1>}]} {
    %c0 = arith.constant 0 : index
    %c0_0 = arith.constant 0 : index
    %c0_1 = arith.constant 0 : index
    %0 = vector.load %arg1[%c0, %c0_0, %c0_1] : memref<1x256x128xf32, #tpu.memory_space<vmem>>, vector<1x256x128xf32>
    %1 = vector.shape_cast %0 : vector<1x256x128xf32> to vector<256x128xf32>
    %c0_2 = arith.constant 0 : index
    %c0_3 = arith.constant 0 : index
    %2 = vector.load %arg2[%c0_2, %c0_3] : memref<128x8xf32, #tpu.memory_space<vmem>>, vector<128x8xf32>
    %cst = arith.constant dense<0.000000e+00> : vector<256x8xf32>
    %3 = tpu.matmul %1, %2, %cst {dimension_numbers = #tpu.dot_dimension_numbers<[1], [0], [0], [1], [0, 0, 1, 1], [], []>} : vector<256x128xf32>, vector<128x8xf32>, vector<256x8xf32> -> vector<256x8xf32>
    %c0_4 = arith.constant 0 : index
    %c0_5 = arith.constant 0 : index
    %4 = vector.load %arg3[%c0_4, %c0_5] : memref<416x256xf32, #tpu.memory_space<vmem>>, vector<416x256xf32>
    %cst_6 = arith.constant dense<0.000000e+00> : vector<416x8xf32>
    %5 = tpu.matmul %4, %3, %cst_6 {dimension_numbers = #tpu.dot_dimension_numbers<[1], [0], [0], [1], [0, 0, 1, 1], [], []>} : vector<416x256xf32>, vector<256x8xf32>, vector<416x8xf32> -> vector<416x8xf32>
    %6 = vector.extract_strided_slice %5 {offsets = [0, 0], sizes = [104, 8], strides = [1, 1]} : vector<416x8xf32> to vector<104x8xf32>
    %7 = vector.extract_strided_slice %5 {offsets = [104, 0], sizes = [104, 8], strides = [1, 1]} : vector<416x8xf32> to vector<104x8xf32>
    %8 = arith.maximumf %6, %7 : vector<104x8xf32>
    %9 = vector.extract_strided_slice %5 {offsets = [208, 0], sizes = [104, 8], strides = [1, 1]} : vector<416x8xf32> to vector<104x8xf32>
    %10 = vector.extract_strided_slice %5 {offsets = [312, 0], sizes = [104, 8], strides = [1, 1]} : vector<416x8xf32> to vector<104x8xf32>
    %11 = arith.maximumf %9, %10 : vector<104x8xf32>
    %12 = arith.maximumf %8, %11 : vector<104x8xf32>
    %c0_7 = arith.constant 0 : index
    %c0_8 = arith.constant 0 : index
    %13 = vector.load %arg4[%c0_7, %c0_8] : memref<104x8xf32, #tpu.memory_space<vmem>>, vector<104x8xf32>
    %14 = arith.addf %12, %13 : vector<104x8xf32>
    %cst_9 = arith.constant 0.000000e+00 : f32
    %15 = vector.broadcast %cst_9 : f32 to vector<104x8xf32>
    %16 = arith.maximumf %14, %15 : vector<104x8xf32>
    %c0_10 = arith.constant 0 : index
    %c0_11 = arith.constant 0 : index
    %17 = vector.load %arg11[%c0_10, %c0_11] : memref<104x8xf32, #tpu.memory_space<vmem>>, vector<104x8xf32>
    tpu.vector_store %arg11[%c0_10, %c0_11], %16 {strides = array<i32>} : memref<104x8xf32, #tpu.memory_space<vmem>>, vector<104x8xf32>,
    %c0_12 = arith.constant 0 : index
    %c0_13 = arith.constant 0 : index
    %18 = vector.load %arg11[%c0_12, %c0_13] : memref<104x8xf32, #tpu.memory_space<vmem>>, vector<80x8xf32>
    %c0_14 = arith.constant 0 : index
    %c0_15 = arith.constant 0 : index
    %19 = vector.load %arg5[%c0_14, %c0_15] : memref<72x8xf32, #tpu.memory_space<vmem>>, vector<8x8xf32>
    %cst_16 = arith.constant dense<0.000000e+00> : vector<80x8xf32>
    %20 = tpu.matmul %18, %19, %cst_16 {dimension_numbers = #tpu.dot_dimension_numbers<[1], [0], [0], [1], [0, 0, 1, 1], [], []>} : vector<80x8xf32>, vector<8x8xf32>, vector<80x8xf32> -> vector<80x8xf32>
    %c1 = arith.constant 1 : index
    %c0_17 = arith.constant 0 : index
    %21 = vector.load %arg11[%c1, %c0_17] : memref<104x8xf32, #tpu.memory_space<vmem>>, vector<80x8xf32>
    %c8 = arith.constant 8 : index
    %c0_18 = arith.constant 0 : index
    %22 = vector.load %arg5[%c8, %c0_18] : memref<72x8xf32, #tpu.memory_space<vmem>>, vector<8x8xf32>
    %cst_19 = arith.constant dense<0.000000e+00> : vector<80x8xf32>
    %23 = tpu.matmul %21, %22, %cst_19 {dimension_numbers = #tpu.dot_dimension_numbers<[1], [0], [0], [1], [0, 0, 1, 1], [], []>} : vector<80x8xf32>, vector<8x8xf32>, vector<80x8xf32> -> vector<80x8xf32>
    %24 = arith.addf %20, %23 : vector<80x8xf32>
    %c2 = arith.constant 2 : index
    %c0_20 = arith.constant 0 : index
    %25 = vector.load %arg11[%c2, %c0_20] : memref<104x8xf32, #tpu.memory_space<vmem>>, vector<80x8xf32>
    %c16 = arith.constant 16 : index
    %c0_21 = arith.constant 0 : index
    %26 = vector.load %arg5[%c16, %c0_21] : memref<72x8xf32, #tpu.memory_space<vmem>>, vector<8x8xf32>
    %cst_22 = arith.constant dense<0.000000e+00> : vector<80x8xf32>
    %27 = tpu.matmul %25, %26, %cst_22 {dimension_numbers = #tpu.dot_dimension_numbers<[1], [0], [0], [1], [0, 0, 1, 1], [], []>} : vector<80x8xf32>, vector<8x8xf32>, vector<80x8xf32> -> vector<80x8xf32>
    %28 = arith.addf %24, %27 : vector<80x8xf32>
    %c10 = arith.constant 10 : index
    %c0_23 = arith.constant 0 : index
    %29 = vector.load %arg11[%c10, %c0_23] : memref<104x8xf32, #tpu.memory_space<vmem>>, vector<80x8xf32>
    %c24 = arith.constant 24 : index
    %c0_24 = arith.constant 0 : index
    %30 = vector.load %arg5[%c24, %c0_24] : memref<72x8xf32, #tpu.memory_space<vmem>>, vector<8x8xf32>
    %cst_25 = arith.constant dense<0.000000e+00> : vector<80x8xf32>
    %31 = tpu.matmul %29, %30, %cst_25 {dimension_numbers = #tpu.dot_dimension_numbers<[1], [0], [0], [1], [0, 0, 1, 1], [], []>} : vector<80x8xf32>, vector<8x8xf32>, vector<80x8xf32> -> vector<80x8xf32>
    %32 = arith.addf %28, %31 : vector<80x8xf32>
    %c11 = arith.constant 11 : index
    %c0_26 = arith.constant 0 : index
    %33 = vector.load %arg11[%c11, %c0_26] : memref<104x8xf32, #tpu.memory_space<vmem>>, vector<80x8xf32>
    %c32 = arith.constant 32 : index
    %c0_27 = arith.constant 0 : index
    %34 = vector.load %arg5[%c32, %c0_27] : memref<72x8xf32, #tpu.memory_space<vmem>>, vector<8x8xf32>
    %cst_28 = arith.constant dense<0.000000e+00> : vector<80x8xf32>
    %35 = tpu.matmul %33, %34, %cst_28 {dimension_numbers = #tpu.dot_dimension_numbers<[1], [0], [0], [1], [0, 0, 1, 1], [], []>} : vector<80x8xf32>, vector<8x8xf32>, vector<80x8xf32> -> vector<80x8xf32>
    %36 = arith.addf %32, %35 : vector<80x8xf32>
    %c12 = arith.constant 12 : index
    %c0_29 = arith.constant 0 : index
    %37 = vector.load %arg11[%c12, %c0_29] : memref<104x8xf32, #tpu.memory_space<vmem>>, vector<80x8xf32>
    %c40 = arith.constant 40 : index
    %c0_30 = arith.constant 0 : index
    %38 = vector.load %arg5[%c40, %c0_30] : memref<72x8xf32, #tpu.memory_space<vmem>>, vector<8x8xf32>
    %cst_31 = arith.constant dense<0.000000e+00> : vector<80x8xf32>
    %39 = tpu.matmul %37, %38, %cst_31 {dimension_numbers = #tpu.dot_dimension_numbers<[1], [0], [0], [1], [0, 0, 1, 1], [], []>} : vector<80x8xf32>, vector<8x8xf32>, vector<80x8xf32> -> vector<80x8xf32>
    %40 = arith.addf %36, %39 : vector<80x8xf32>
    %c20 = arith.constant 20 : index
    %c0_32 = arith.constant 0 : index
    %41 = vector.load %arg11[%c20, %c0_32] : memref<104x8xf32, #tpu.memory_space<vmem>>, vector<80x8xf32>
    %c48 = arith.constant 48 : index
    %c0_33 = arith.constant 0 : index
    %42 = vector.load %arg5[%c48, %c0_33] : memref<72x8xf32, #tpu.memory_space<vmem>>, vector<8x8xf32>
    %cst_34 = arith.constant dense<0.000000e+00> : vector<80x8xf32>
    %43 = tpu.matmul %41, %42, %cst_34 {dimension_numbers = #tpu.dot_dimension_numbers<[1], [0], [0], [1], [0, 0, 1, 1], [], []>} : vector<80x8xf32>, vector<8x8xf32>, vector<80x8xf32> -> vector<80x8xf32>
    %44 = arith.addf %40, %43 : vector<80x8xf32>
    %c21 = arith.constant 21 : index
    %c0_35 = arith.constant 0 : index
    %45 = vector.load %arg11[%c21, %c0_35] : memref<104x8xf32, #tpu.memory_space<vmem>>, vector<80x8xf32>
    %c56 = arith.constant 56 : index
    %c0_36 = arith.constant 0 : index
    %46 = vector.load %arg5[%c56, %c0_36] : memref<72x8xf32, #tpu.memory_space<vmem>>, vector<8x8xf32>
    %cst_37 = arith.constant dense<0.000000e+00> : vector<80x8xf32>
    %47 = tpu.matmul %45, %46, %cst_37 {dimension_numbers = #tpu.dot_dimension_numbers<[1], [0], [0], [1], [0, 0, 1, 1], [], []>} : vector<80x8xf32>, vector<8x8xf32>, vector<80x8xf32> -> vector<80x8xf32>
    %48 = arith.addf %44, %47 : vector<80x8xf32>
    %c22 = arith.constant 22 : index
    %c0_38 = arith.constant 0 : index
    %49 = vector.load %arg11[%c22, %c0_38] : memref<104x8xf32, #tpu.memory_space<vmem>>, vector<80x8xf32>
    %c64 = arith.constant 64 : index
    %c0_39 = arith.constant 0 : index
    %50 = vector.load %arg5[%c64, %c0_39] : memref<72x8xf32, #tpu.memory_space<vmem>>, vector<8x8xf32>
    %cst_40 = arith.constant dense<0.000000e+00> : vector<80x8xf32>
    %51 = tpu.matmul %49, %50, %cst_40 {dimension_numbers = #tpu.dot_dimension_numbers<[1], [0], [0], [1], [0, 0, 1, 1], [], []>} : vector<80x8xf32>, vector<8x8xf32>, vector<80x8xf32> -> vector<80x8xf32>
    %52 = arith.addf %48, %51 : vector<80x8xf32>
    %c0_41 = arith.constant 0 : index
    %c0_42 = arith.constant 0 : index
    %53 = vector.load %arg6[%c0_41, %c0_42] : memref<160x80xf32, #tpu.memory_space<vmem>>, vector<160x80xf32>
    %cst_43 = arith.constant dense<0.000000e+00> : vector<160x8xf32>
    %54 = tpu.matmul %53, %52, %cst_43 {dimension_numbers = #tpu.dot_dimension_numbers<[1], [0], [0], [1], [0, 0, 1, 1], [], []>} : vector<160x80xf32>, vector<80x8xf32>, vector<160x8xf32> -> vector<160x8xf32>
    %55 = vector.extract_strided_slice %54 {offsets = [0, 0], sizes = [40, 8], strides = [1, 1]} : vector<160x8xf32> to vector<40x8xf32>
    %56 = vector.extract_strided_slice %54 {offsets = [40, 0], sizes = [40, 8], strides = [1, 1]} : vector<160x8xf32> to vector<40x8xf32>
    %57 = arith.maximumf %55, %56 : vector<40x8xf32>
    %58 = vector.extract_strided_slice %54 {offsets = [80, 0], sizes = [40, 8], strides = [1, 1]} : vector<160x8xf32> to vector<40x8xf32>
    %59 = vector.extract_strided_slice %54 {offsets = [120, 0], sizes = [40, 8], strides = [1, 1]} : vector<160x8xf32> to vector<40x8xf32>
    %60 = arith.maximumf %58, %59 : vector<40x8xf32>
    %61 = arith.maximumf %57, %60 : vector<40x8xf32>
    %c0_44 = arith.constant 0 : index
    %c0_45 = arith.constant 0 : index
    %62 = vector.load %arg7[%c0_44, %c0_45] : memref<40x8xf32, #tpu.memory_space<vmem>>, vector<40x8xf32>
    %63 = arith.addf %61, %62 : vector<40x8xf32>
    %cst_46 = arith.constant 0.000000e+00 : f32
    %64 = vector.broadcast %cst_46 : f32 to vector<40x8xf32>
    %65 = arith.maximumf %63, %64 : vector<40x8xf32>
    %c0_47 = arith.constant 0 : index
    %c0_48 = arith.constant 0 : index
    %66 = vector.load %arg12[%c0_47, %c0_48] : memref<40x8xf32, #tpu.memory_space<vmem>>, vector<40x8xf32>
    tpu.vector_store %arg12[%c0_47, %c0_48], %65 {strides = array<i32>} : memref<40x8xf32, #tpu.memory_space<vmem>>, vector<40x8xf32>,
    %c0_49 = arith.constant 0 : index
    %c0_50 = arith.constant 0 : index
    %67 = vector.load %arg12[%c0_49, %c0_50] : memref<40x8xf32, #tpu.memory_space<vmem>>, vector<24x8xf32>
    %c0_51 = arith.constant 0 : index
    %c0_52 = arith.constant 0 : index
    %68 = vector.load %arg8[%c0_51, %c0_52] : memref<9x8xf32, #tpu.memory_space<vmem>>, vector<1x8xf32>
    %69 = vector.broadcast %68 : vector<1x8xf32> to vector<24x8xf32>
    %70 = arith.mulf %67, %69 : vector<24x8xf32>
    %c1_53 = arith.constant 1 : index
    %c0_54 = arith.constant 0 : index
    %71 = vector.load %arg12[%c1_53, %c0_54] : memref<40x8xf32, #tpu.memory_space<vmem>>, vector<24x8xf32>
    %c1_55 = arith.constant 1 : index
    %c0_56 = arith.constant 0 : index
    %72 = vector.load %arg8[%c1_55, %c0_56] : memref<9x8xf32, #tpu.memory_space<vmem>>, vector<1x8xf32>
    %73 = vector.broadcast %72 : vector<1x8xf32> to vector<24x8xf32>
    %74 = arith.mulf %71, %73 : vector<24x8xf32>
    %75 = arith.addf %70, %74 : vector<24x8xf32>
    %c2_57 = arith.constant 2 : index
    %c0_58 = arith.constant 0 : index
    %76 = vector.load %arg12[%c2_57, %c0_58] : memref<40x8xf32, #tpu.memory_space<vmem>>, vector<24x8xf32>
    %c2_59 = arith.constant 2 : index
    %c0_60 = arith.constant 0 : index
    %77 = vector.load %arg8[%c2_59, %c0_60] : memref<9x8xf32, #tpu.memory_space<vmem>>, vector<1x8xf32>
    %78 = vector.broadcast %77 : vector<1x8xf32> to vector<24x8xf32>
    %79 = arith.mulf %76, %78 : vector<24x8xf32>
    %80 = arith.addf %75, %79 : vector<24x8xf32>
    %c6 = arith.constant 6 : index
    %c0_61 = arith.constant 0 : index
    %81 = vector.load %arg12[%c6, %c0_61] : memref<40x8xf32, #tpu.memory_space<vmem>>, vector<24x8xf32>
    %c3 = arith.constant 3 : index
    %c0_62 = arith.constant 0 : index
    %82 = vector.load %arg8[%c3, %c0_62] : memref<9x8xf32, #tpu.memory_space<vmem>>, vector<1x8xf32>
    %83 = vector.broadcast %82 : vector<1x8xf32> to vector<24x8xf32>
    %84 = arith.mulf %81, %83 : vector<24x8xf32>
    %85 = arith.addf %80, %84 : vector<24x8xf32>
    %c7 = arith.constant 7 : index
    %c0_63 = arith.constant 0 : index
    %86 = vector.load %arg12[%c7, %c0_63] : memref<40x8xf32, #tpu.memory_space<vmem>>, vector<24x8xf32>
    %c4 = arith.constant 4 : index
    %c0_64 = arith.constant 0 : index
    %87 = vector.load %arg8[%c4, %c0_64] : memref<9x8xf32, #tpu.memory_space<vmem>>, vector<1x8xf32>
    %88 = vector.broadcast %87 : vector<1x8xf32> to vector<24x8xf32>
    %89 = arith.mulf %86, %88 : vector<24x8xf32>
    %90 = arith.addf %85, %89 : vector<24x8xf32>
    %c8_65 = arith.constant 8 : index
    %c0_66 = arith.constant 0 : index
    %91 = vector.load %arg12[%c8_65, %c0_66] : memref<40x8xf32, #tpu.memory_space<vmem>>, vector<24x8xf32>
    %c5 = arith.constant 5 : index
    %c0_67 = arith.constant 0 : index
    %92 = vector.load %arg8[%c5, %c0_67] : memref<9x8xf32, #tpu.memory_space<vmem>>, vector<1x8xf32>
    %93 = vector.broadcast %92 : vector<1x8xf32> to vector<24x8xf32>
    %94 = arith.mulf %91, %93 : vector<24x8xf32>
    %95 = arith.addf %90, %94 : vector<24x8xf32>
    %c12_68 = arith.constant 12 : index
    %c0_69 = arith.constant 0 : index
    %96 = vector.load %arg12[%c12_68, %c0_69] : memref<40x8xf32, #tpu.memory_space<vmem>>, vector<24x8xf32>
    %c6_70 = arith.constant 6 : index
    %c0_71 = arith.constant 0 : index
    %97 = vector.load %arg8[%c6_70, %c0_71] : memref<9x8xf32, #tpu.memory_space<vmem>>, vector<1x8xf32>
    %98 = vector.broadcast %97 : vector<1x8xf32> to vector<24x8xf32>
    %99 = arith.mulf %96, %98 : vector<24x8xf32>
    %100 = arith.addf %95, %99 : vector<24x8xf32>
    %c13 = arith.constant 13 : index
    %c0_72 = arith.constant 0 : index
    %101 = vector.load %arg12[%c13, %c0_72] : memref<40x8xf32, #tpu.memory_space<vmem>>, vector<24x8xf32>
    %c7_73 = arith.constant 7 : index
    %c0_74 = arith.constant 0 : index
    %102 = vector.load %arg8[%c7_73, %c0_74] : memref<9x8xf32, #tpu.memory_space<vmem>>, vector<1x8xf32>
    %103 = vector.broadcast %102 : vector<1x8xf32> to vector<24x8xf32>
    %104 = arith.mulf %101, %103 : vector<24x8xf32>
    %105 = arith.addf %100, %104 : vector<24x8xf32>
    %c14 = arith.constant 14 : index
    %c0_75 = arith.constant 0 : index
    %106 = vector.load %arg12[%c14, %c0_75] : memref<40x8xf32, #tpu.memory_space<vmem>>, vector<24x8xf32>
    %c8_76 = arith.constant 8 : index
    %c0_77 = arith.constant 0 : index
    %107 = vector.load %arg8[%c8_76, %c0_77] : memref<9x8xf32, #tpu.memory_space<vmem>>, vector<1x8xf32>
    %108 = vector.broadcast %107 : vector<1x8xf32> to vector<24x8xf32>
    %109 = arith.mulf %106, %108 : vector<24x8xf32>
    %110 = arith.addf %105, %109 : vector<24x8xf32>
    %cst_78 = arith.constant dense<0.000000e+00> : vector<24xf32>
    %111 = vector.multi_reduction <add>, %110, %cst_78 [1] : vector<24x8xf32> to vector<24xf32>
    %112 = vector.shape_cast %111 : vector<24xf32> to vector<24x1xf32>
    %c0_79 = arith.constant 0 : index
    %113 = memref.load %arg9[%c0_79] : memref<1xf32, #tpu.memory_space<smem>>
    %114 = vector.broadcast %113 : f32 to vector<24x1xf32>
    %115 = arith.addf %112, %114 : vector<24x1xf32>
    %cst_80 = arith.constant 0.000000e+00 : f32
    %116 = vector.broadcast %cst_80 : f32 to vector<24x1xf32>
    %117 = arith.maximumf %115, %116 : vector<24x1xf32>
    %c0_81 = arith.constant 0 : index
    %c0_82 = arith.constant 0 : index
    %c0_83 = arith.constant 0 : index
    %118 = vector.load %arg10[%c0_81, %c0_82, %c0_83] : memref<1x24x1xf32, #tpu.memory_space<vmem>>, vector<1x24x1xf32>
    %119 = vector.shape_cast %118 : vector<1x24x1xf32> to vector<24x1xf32>
    %120 = vector.shape_cast %117 : vector<24x1xf32> to vector<1x24x1xf32>
    tpu.vector_store %arg10[%c0_81, %c0_82, %c0_83], %120 {strides = array<i32>} : memref<1x24x1xf32, #tpu.memory_space<vmem>>, vector<1x24x1xf32>,
    return
  }
  func.func @transform_0(%arg0: i32) -> (i32, i32, i32) {
    %c0_i32 = arith.constant 0 : i32
    %c0_i32_0 = arith.constant 0 : i32
    %c0_i32_1 = arith.constant 0 : i32
    return %arg0, %c0_i32, %c0_i32_0 : i32, i32, i32
  }
  func.func @transform_1(%arg0: i32) -> (i32, i32) {
    %c0_i32 = arith.constant 0 : i32
    %c0_i32_0 = arith.constant 0 : i32
    %c0_i32_1 = arith.constant 0 : i32
    return %c0_i32, %c0_i32_0 : i32, i32
  }
  func.func @transform_2(%arg0: i32) -> (i32, i32) {
    %c0_i32 = arith.constant 0 : i32
    %c0_i32_0 = arith.constant 0 : i32
    %c0_i32_1 = arith.constant 0 : i32
    return %c0_i32, %c0_i32_0 : i32, i32
  }
  func.func @transform_3(%arg0: i32) -> (i32, i32) {
    %c0_i32 = arith.constant 0 : i32
    %c0_i32_0 = arith.constant 0 : i32
    %c0_i32_1 = arith.constant 0 : i32
    return %c0_i32, %c0_i32_0 : i32, i32
  }
  func.func @transform_4(%arg0: i32) -> (i32, i32) {
    %c0_i32 = arith.constant 0 : i32
    %c0_i32_0 = arith.constant 0 : i32
    %c0_i32_1 = arith.constant 0 : i32
    return %c0_i32, %c0_i32_0 : i32, i32
  }
  func.func @transform_5(%arg0: i32) -> (i32, i32) {
    %c0_i32 = arith.constant 0 : i32
    %c0_i32_0 = arith.constant 0 : i32
    %c0_i32_1 = arith.constant 0 : i32
    return %c0_i32, %c0_i32_0 : i32, i32
  }
  func.func @transform_6(%arg0: i32) -> (i32, i32) {
    %c0_i32 = arith.constant 0 : i32
    %c0_i32_0 = arith.constant 0 : i32
    %c0_i32_1 = arith.constant 0 : i32
    return %c0_i32, %c0_i32_0 : i32, i32
  }
  func.func @transform_7(%arg0: i32) -> (i32, i32) {
    %c0_i32 = arith.constant 0 : i32
    %c0_i32_0 = arith.constant 0 : i32
    %c0_i32_1 = arith.constant 0 : i32
    return %c0_i32, %c0_i32_0 : i32, i32
  }
  func.func @transform_8(%arg0: i32) -> i32 {
    %c0_i32 = arith.constant 0 : i32
    %c0_i32_0 = arith.constant 0 : i32
    return %c0_i32 : i32
  }
  func.func @transform_9(%arg0: i32) -> (i32, i32, i32) {
    %c0_i32 = arith.constant 0 : i32
    %c0_i32_0 = arith.constant 0 : i32
    %c0_i32_1 = arith.constant 0 : i32
    return %arg0, %c0_i32, %c0_i32_0 : i32, i32, i32
  }
}

</mosaic_0001>

<bundles_post_ra>
// kernel: squeeze.3
= control target key start
LH: loop header
LB: loop body
LE: loop exit
PB: predicated region body
PF: predicated region fallthrough
CT: control target
= control target key end

     0   :  { %s43_s8 = smov 110   ;;  %vm7_vm0 = vcmask 48128   ;;  %s44_s9 = smov 116   ;;  %s64_s0 = inlined_call_operand.vmem [shape: f32[2,24], index: 0, kind: input, shape index: {}]   ;;  %s65_s1 = inlined_call_operand.vmem [shape: f32[2,4,6], index: 1, kind: output, shape index: {}]  }
   0x1   :  { %v4_v0 = vld [vmem:[%s64_s0] sm:$0x3]  ;;  %s42_s0 = smov 122  }
   0x2   :  { %5 = vst [vmem:[#allocation1] sm:$0x3] %v4_v0 }
   0x9   :  { %v9_v1 = vld [vmem:[#allocation1] sm:$0x3]  }
   0xa   :  { %v21_v2 = vld [vmem:[#allocation1] sm:$0x3]   ;;  %10 = vrot.lane.b32.xlu0 %v9_v1, %s42_s0 }
   0xb   :  { %22 = vrot.lane.b32.xlu1 %v21_v2, %s43_s8  ;;  %v6_v3 = vld [vmem:[#allocation1] sm:$0x3]  }
   0xc   :  { %v15_v4 = vld [vmem:[#allocation1] sm:$0x3]   ;;  %8 = vst.msk [vmem:[#allocation0] ss:$8 sm:$0x3] %vm7_vm0, %v6_v3  }
   0xe   :  { %16 = vrot.lane.b32.xlu0 %v15_v4, %s44_s9 }
  0x7c   :  { %v11_v5 = vpop.permute.xlu0 %10  }
  0x7d   :  { %v23_v6 = vpop.permute.xlu1 %22   ;;  %14 = vst.msk [vmem:[#allocation0 + $0x1] ss:$8 sm:$0x3] %vm7_vm0, %v11_v5  }
  0x7e   :  { %26 = vst.msk [vmem:[#allocation0 + $0x3] ss:$8 sm:$0x3] %vm7_vm0, %v23_v6  }
  0x80   :  { %v17_v7 = vpop.permute.xlu0 %16  }
  0x81   :  { %20 = vst.msk [vmem:[#allocation0 + $0x2] ss:$8 sm:$0x3] %vm7_vm0, %v17_v7  }
  0x88   :  { %v30_v8 = vld [vmem:[#allocation0] sm:$0xf]  ;;  %v34_v9 = vld [vmem:[#allocation0 + $0x8] sm:$0xf] }
  0x89   :  { %32 = vst [vmem:[%s65_s1] sm:$0xf] %v30_v8  ;;  %38 = vst [vmem:[%s65_s1 + $0x4] sm:$0xf] %v34_v9 }

// kernel: encoder_forward.1
= control target key start
LH: loop header
LB: loop body
LE: loop exit
PB: predicated region body
PF: predicated region fallthrough
CT: control target
= control target key end

     0   :  { %s3952_s11 = smov 0   ;;  %s4847_s0 = inlined_call_operand.vmem [shape: f32[2,256,128], index: 0, kind: input, shape index: {}]   ;;  %s4848_s1 = inlined_call_operand.vmem [shape: f32[128,8], index: 1, kind: input, shape index: {}]   ;;  %s4849_s2 = inlined_call_operand.vmem [shape: f32[416,256], index: 2, kind: input, shape index: {}]   ;;  %s4850_s3 = inlined_call_operand.vmem [shape: f32[104,8], index: 3, kind: input, shape index: {}]   ;;  %s4851_s4 = inlined_call_operand.vmem [shape: f32[72,8], index: 4, kind: input, shape index: {}]   ;;  %s4852_s5 = inlined_call_operand.vmem [shape: f32[160,80], index: 5, kind: input, shape index: {}]   ;;  %s4853_s6 = inlined_call_operand.vmem [shape: f32[40,8], index: 6, kind: input, shape index: {}]   ;;  %s4854_s7 = inlined_call_operand.vmem [shape: f32[9,8], index: 7, kind: input, shape index: {}]   ;;  %s4855_s8 = inlined_call_operand.<no memory space> [shape: f32[1], index: 8, kind: input, shape index: {}]   ;;  %s4856_s9 = inlined_call_operand.vmem [shape: f32[2,24,1], index: 9, kind: output, shape index: {}]  }
   0x1   :  { %14 = sst [smem:[#allocation4]] %s4855_s8 }
   0x2 LB: > { %s3078_s12 = sadd.s32 4294967295, %s3896_s11   ;;  %p3082_p0 = scmp.ge.s32.totalorder %s3896_s11, 1  ;;  %s3896_s11 = sphi %s3952_s11, %s20_s11  }
   0x3   : > { %p288_p1 = scmp.lt.s32.totalorder %s3896_s11, 3 }
   0x5   : > { %p289_p2 = pnand %p3082_p0, %p288_p1 }
   0x6   : > { %v366_v0 = vld [vmem:[%s4848_s1] sm:$0xff] (!%p289_p2)  ;;  %v367_v1 = vld [vmem:[%s4848_s1 + $0x8] sm:$0xff] (!%p289_p2)  ;;  %v368_v2 = vld [vmem:[%s4848_s1 + $0x10] sm:$0xff] (!%p289_p2)  ;;  %p324_p3 = scmp.lt.s32.totalorder (!%p289_p2), %s3078_s12, 1  ;;  %v3898_v56 = vmov (!%p289_p2), 0.0|0.0   ;;  %vm1114_vm0 = vcmask (!%p289_p2), 64512  }
   0x7   : > { %292 = sbr.rel (%p289_p2) target bundleno = 1538 (0x602), region = 56  ;;  %v3668_v3 = vpack.c.bf16 (!%p289_p2), %v367_v1, %v366_v0  ;;  %v369_v4 = vld [vmem:[%s4848_s1 + $0x18] sm:$0xff] (!%p289_p2)  ;;  %v370_v6 = vld [vmem:[%s4848_s1 + $0x20] sm:$0xff] (!%p289_p2)  ;;  %v371_v7 = vld [vmem:[%s4848_s1 + $0x28] sm:$0xff] (!%p289_p2)  ;;  %3768 = vmatprep.subr.bf16.mxu1 (!%p289_p2), %v3898_v56  ;;  %vm2622_vm1 = vcmask (!%p289_p2), 654336   ;;  %s3011_s29 = sld [smem:[#allocation4]] (!%p289_p2) }
   0x8   : > { %v3672_v5 = vpack.c.bf16 (!%p289_p2), %v369_v4, %v368_v2  ;;  %v3676_v8 = vpack.c.bf16 (!%p289_p2), %v371_v7, %v370_v6  ;;  %v372_v9 = vld [vmem:[%s4848_s1 + $0x30] sm:$0xff] (!%p289_p2)  ;;  %v373_v10 = vld [vmem:[%s4848_s1 + $0x38] sm:$0xff] (!%p289_p2)  ;;  %v374_v13 = vld [vmem:[%s4848_s1 + $0x40] sm:$0xff] (!%p289_p2)  ;;  %vm3019_vm2 = vcmask (!%p289_p2), 7168  }
   0x9   : > { %3669 = vmatprep.subr.bf16.mxu0 (!%p289_p2), %v3668_v3  ;;  %v3680_v12 = vpack.c.bf16 (!%p289_p2), %v373_v10, %v372_v9  ;;  %v375_v14 = vld [vmem:[%s4848_s1 + $0x48] sm:$0xff] (!%p289_p2)  ;;  %v376_v16 = vld [vmem:[%s4848_s1 + $0x50] sm:$0xff] (!%p289_p2)  ;;  %v377_v17 = vld [vmem:[%s4848_s1 + $0x58] sm:$0xff] (!%p289_p2) }
   0xa   : > { %3671 = vmatpush3.bf16.msra.mxu0 (!%p289_p2), %v3668_v3  ;;  %v3684_v15 = vpack.c.bf16 (!%p289_p2), %v375_v14, %v374_v13  ;;  %v3688_v18 = vpack.c.bf16 (!%p289_p2), %v377_v17, %v376_v16  ;;  %v378_v19 = vld [vmem:[%s4848_s1 + $0x60] sm:$0xff] (!%p289_p2)  ;;  %v379_v20 = vld [vmem:[%s4848_s1 + $0x68] sm:$0xff] (!%p289_p2)  ;;  %v380_v22 = vld [vmem:[%s4848_s1 + $0x70] sm:$0xff] (!%p289_p2) }
   0xb   : > { %3673 = vmatprep.subr.bf16.mxu0 (!%p289_p2), %v3672_v5  ;;  %v3692_v21 = vpack.c.bf16 (!%p289_p2), %v379_v20, %v378_v19  ;;  %v381_v23 = vld [vmem:[%s4848_s1 + $0x78] sm:$0xff] (!%p289_p2)  ;;  %v616_v57 = vld [vmem:[%s4849_s2 + $0x48] sm:$0xff] (!%p289_p2) }
   0xc   : > { %v3696_v24 = vpack.c.bf16 (!%p289_p2), %v381_v23, %v380_v22  ;;  %795 = vmatprep.mubr.f32.mxu1 (!%p289_p2), %v616_v57  ;;  %v608_v58 = vld [vmem:[%s4849_s2 + $0x8] sm:$0xff] (!%p289_p2) }
   0xd   : > { %v624_v57 = vld [vmem:[%s4849_s2 + $0x88] sm:$0xff] (!%p289_p2) }
   0xe   : > { %s4858_s12 = smov (!%p324_p3, %s3078_s12), 1  ;;  %3675 = vmatpush3.bf16.msra.mxu0 %v3672_v5 }
   0xf   : > { %s3207_s24 = sshll.u32 %s4858_s12, 8  ;;  %3677 = vmatprep.subr.bf16.mxu0 %v3676_v8  ;;  %s3880_s30 = smul.u32 24, %s4858_s12 }
  0x10   : > { %s3984_s27 = scalar_lea.vmem %s4847_s0, %s3207_s24 }
  0x11   : > { %v334_v11 = vld [vmem:[%s3984_s27] sm:$0xff]  ;;  %v335_v25 = vld [vmem:[%s3984_s27 + $0x8] sm:$0xff]  ;;  %v336_v26 = vld [vmem:[%s3984_s27 + $0x10] sm:$0xff] }
  0x12   : > { %3417 = vmatprep.mubr.f32.mxu0 %v334_v11  ;;  %3679 = vmatpush3.bf16.msra.mxu0 %v3676_v8  ;;  %v337_v27 = vld [vmem:[%s3984_s27 + $0x18] sm:$0xff]  ;;  %v338_v28 = vld [vmem:[%s3984_s27 + $0x20] sm:$0xff]  ;;  %v339_v29 = vld [vmem:[%s3984_s27 + $0x28] sm:$0xff] }
  0x13   : > { %3681 = vmatprep.subr.bf16.mxu0 %v3680_v12  ;;  %v340_v30 = vld [vmem:[%s3984_s27 + $0x30] sm:$0xff]  ;;  %v341_v31 = vld [vmem:[%s3984_s27 + $0x38] sm:$0xff]  ;;  %v342_v32 = vld [vmem:[%s3984_s27 + $0x40] sm:$0xff] }
  0x14   : > { %v343_v33 = vld [vmem:[%s3984_s27 + $0x48] sm:$0xff]  ;;  %v344_v34 = vld [vmem:[%s3984_s27 + $0x50] sm:$0xff]  ;;  %v345_v35 = vld [vmem:[%s3984_s27 + $0x58] sm:$0xff] }
  0x15   : > { %v346_v36 = vld [vmem:[%s3984_s27 + $0x60] sm:$0xff]  ;;  %v347_v37 = vld [vmem:[%s3984_s27 + $0x68] sm:$0xff]  ;;  %v348_v38 = vld [vmem:[%s3984_s27 + $0x70] sm:$0xff] }
  0x16   : > { %3683 = vmatpush3.bf16.msra.mxu0 %v3680_v12  ;;  %v349_v39 = vld [vmem:[%s3984_s27 + $0x78] sm:$0xff]  ;;  %v350_v40 = vld [vmem:[%s3984_s27 + $0x80] sm:$0xff]  ;;  %v351_v41 = vld [vmem:[%s3984_s27 + $0x88] sm:$0xff] }
  0x17   : > { %3685 = vmatprep.subr.bf16.mxu0 %v3684_v15  ;;  %v352_v42 = vld [vmem:[%s3984_s27 + $0x90] sm:$0xff]  ;;  %v353_v43 = vld [vmem:[%s3984_s27 + $0x98] sm:$0xff]  ;;  %v354_v44 = vld [vmem:[%s3984_s27 + $0xa0] sm:$0xff] }
  0x18   : > { %v355_v45 = vld [vmem:[%s3984_s27 + $0xa8] sm:$0xff]  ;;  %v356_v46 = vld [vmem:[%s3984_s27 + $0xb0] sm:$0xff]  ;;  %v357_v47 = vld [vmem:[%s3984_s27 + $0xb8] sm:$0xff] }
  0x19   : > { %v358_v48 = vld [vmem:[%s3984_s27 + $0xc0] sm:$0xff]  ;;  %v359_v49 = vld [vmem:[%s3984_s27 + $0xc8] sm:$0xff]  ;;  %v360_v50 = vld [vmem:[%s3984_s27 + $0xd0] sm:$0xff] }
  0x1a   : > { %3687 = vmatpush3.bf16.msra.mxu0 %v3684_v15  ;;  %v361_v51 = vld [vmem:[%s3984_s27 + $0xd8] sm:$0xff]  ;;  %v362_v52 = vld [vmem:[%s3984_s27 + $0xe0] sm:$0xff]  ;;  %v363_v53 = vld [vmem:[%s3984_s27 + $0xe8] sm:$0xff] }
  0x1b   : > { %3689 = vmatprep.subr.bf16.mxu0 %v3688_v18  ;;  %v364_v54 = vld [vmem:[%s3984_s27 + $0xf0] sm:$0xff]  ;;  %v365_v55 = vld [vmem:[%s3984_s27 + $0xf8] sm:$0xff]  ;;  %s333_s27 = scalar_lea.vmem %s4856_s9, %s3880_s30 }
  0x1e   : > { %3691 = vmatpush3.bf16.msra.mxu0 %v3688_v18 }
  0x1f   : > { %3693 = vmatprep.subr.bf16.mxu0 %v3692_v21 }
  0x22   : > { %3695 = vmatpush3.bf16.msra.mxu0 %v3692_v21 }
  0x23   : > { %3697 = vmatprep.subr.bf16.mxu0 %v3696_v24 }
  0x26   : > { %3699 = vmatpush3.bf16.msra.mxu0 %v3696_v24 }
  0x27   : > { %3700 = vmatprep.subr.bf16.mxu0 %v3898_v56 }
  0x29   : > { %3418 = vmatmul.mubr.f32.vlgmr.msra.gmra.mrb[0].mxu0 %v335_v25 }
  0x2a   : > { %3420 = vmatprep.mubr.f32.mxu0 %v336_v26 }
  0x2d   : > { %3421 = vmatmul.mubr.f32.gmra.mrb[2].mxu0 %v337_v27 }
  0x2e   : > { %3423 = vmatprep.mubr.f32.mxu0 %v338_v28 }
  0x31   : > { %3424 = vmatmul.mubr.f32.gmra.mrb[4].mxu0 %v339_v29 }
  0x32   : > { %3426 = vmatprep.mubr.f32.mxu0 %v340_v30 }
  0x35   : > { %3427 = vmatmul.mubr.f32.gmra.mrb[6].mxu0 %v341_v31 }
  0x36   : > { %3429 = vmatprep.mubr.f32.mxu0 %v342_v32 }
  0x39   : > { %3430 = vmatmul.mubr.f32.gmra.mrb[8].mxu0 %v343_v33 }
  0x3a   : > { %3432 = vmatprep.mubr.f32.mxu0 %v344_v34 }
  0x3d   : > { %3433 = vmatmul.mubr.f32.gmra.mrb[10].mxu0 %v345_v35 }
  0x3e   : > { %3435 = vmatprep.mubr.f32.mxu0 %v346_v36 }
  0x41   : > { %3436 = vmatmul.mubr.f32.gmra.mrb[12].mxu0 %v347_v37 }
  0x42   : > { %3438 = vmatprep.mubr.f32.mxu0 %v348_v38 }
  0x45   : > { %3439 = vmatmul.mubr.f32.gmra.mrb[14].mxu0 %v349_v39 }
  0x46   : > { %3441 = vmatprep.mubr.f32.mxu0 %v350_v40 }
  0x49   : > { %3442 = vmatmul.mubr.f32.gmra.mrb[16].mxu0 %v351_v41 }
  0x4a   : > { %3444 = vmatprep.mubr.f32.mxu0 %v352_v42 }
  0x4d   : > { %3445 = vmatmul.mubr.f32.gmra.mrb[18].mxu0 %v353_v43  ;;  %v615_v43 = vld [vmem:[%s4849_s2 + $0x40] sm:$0xff] }
  0x4e   : > { %3447 = vmatprep.mubr.f32.mxu0 %v354_v44  ;;  %v607_v44 = vld [vmem:[%s4849_s2] sm:$0xff] }
  0x51   : > { %3448 = vmatmul.mubr.f32.gmra.mrb[20].mxu0 %v355_v45  ;;  %v618_v45 = vld [vmem:[%s4849_s2 + $0x58] sm:$0xff] }
  0x52   : > { %3450 = vmatprep.mubr.f32.mxu0 %v356_v46  ;;  %v610_v46 = vld [vmem:[%s4849_s2 + $0x18] sm:$0xff] }
  0x55   : > { %3451 = vmatmul.mubr.f32.gmra.mrb[22].mxu0 %v357_v47  ;;  %v617_v47 = vld [vmem:[%s4849_s2 + $0x50] sm:$0xff] }
  0x56   : > { %3453 = vmatprep.mubr.f32.mxu0 %v358_v48  ;;  %v609_v48 = vld [vmem:[%s4849_s2 + $0x10] sm:$0xff] }
  0x59   : > { %3454 = vmatmul.mubr.f32.gmra.mrb[24].mxu0 %v359_v49  ;;  %v620_v49 = vld [vmem:[%s4849_s2 + $0x68] sm:$0xff] }
  0x5a   : > { %3456 = vmatprep.mubr.f32.mxu0 %v360_v50  ;;  %v612_v50 = vld [vmem:[%s4849_s2 + $0x28] sm:$0xff] }
  0x5d   : > { %3457 = vmatmul.mubr.f32.gmra.mrb[26].mxu0 %v361_v51  ;;  %v619_v51 = vld [vmem:[%s4849_s2 + $0x60] sm:$0xff] }
  0x5e   : > { %3459 = vmatprep.mubr.f32.mxu0 %v362_v52  ;;  %v611_v52 = vld [vmem:[%s4849_s2 + $0x20] sm:$0xff] }
  0x61   : > { %3460 = vmatmul.mubr.f32.gmra.mrb[28].mxu0 %v363_v53  ;;  %v622_v53 = vld [vmem:[%s4849_s2 + $0x78] sm:$0xff] }
  0x62   : > { %3462 = vmatprep.mubr.f32.mxu0 %v364_v54  ;;  %v614_v54 = vld [vmem:[%s4849_s2 + $0x38] sm:$0xff] }
  0x65   : > { %3463 = vmatmul.mubr.f32.gmra.mrb[30].mxu0 %v365_v55  ;;  %v621_v55 = vld [vmem:[%s4849_s2 + $0x70] sm:$0xff] }
  0x66   : > { %775 = vmatprep.mubr.f32.mxu0 %v608_v58  ;;  %v623_v58 = vld [vmem:[%s4849_s2 + $0x80] sm:$0xff] }
  0xfc   : > { %v3419_v59 = vpop.f32.mrb[0].mxu0 }
  0xfd   : > { %v448_v60 = vpop.f32.mrb[1].mxu0 }
  0xfe   : > { %v3701_v61 = vpack.c.bf16 %v3419_v59, %v448_v60  ;;  %v626_v59 = vld [vmem:[%s4849_s2 + $0x98] sm:$0xff]  ;;  %v625_v60 = vld [vmem:[%s4849_s2 + $0x90] sm:$0xff] }
 0x100   : > { %v3422_v62 = vpop.f32.mrb[2].mxu0  ;;  %3702 = vmatpush1.bf16.msra.mxu0 %v3701_v61  ;;  %3784 = vmatpush1.bf16.msra.mxu1 %v3701_v61  ;;  %v628_v61 = vld [vmem:[%s4849_s2 + $0xa8] sm:$0xff] }
 0x101   : > { %v458_v63 = vpop.f32.mrb[3].mxu0  ;;  %3703 = vmatprep.subr.bf16.mxu0 %v3898_v56  ;;  %3769 = vmatprep.subr.bf16.mxu1 %v3898_v56 }
 0x102   : > { %v3704_v0 = vpack.c.bf16 %v3422_v62, %v458_v63  ;;  %v627_v62 = vld [vmem:[%s4849_s2 + $0xa0] sm:$0xff]  ;;  %v630_v63 = vld [vmem:[%s4849_s2 + $0xb8] sm:$0xff] }
 0x104   : > { %v3425_v1 = vpop.f32.mrb[4].mxu0  ;;  %3705 = vmatpush1.bf16.msra.mxu0 %v3704_v0  ;;  %3785 = vmatpush1.bf16.msra.mxu1 %v3704_v0  ;;  %v629_v0 = vld [vmem:[%s4849_s2 + $0xb0] sm:$0xff] }
 0x105   : > { %v468_v2 = vpop.f32.mrb[5].mxu0  ;;  %3706 = vmatprep.subr.bf16.mxu0 %v3898_v56  ;;  %3770 = vmatprep.subr.bf16.mxu1 %v3898_v56 }
 0x106   : > { %v3707_v3 = vpack.c.bf16 %v3425_v1, %v468_v2  ;;  %v632_v1 = vld [vmem:[%s4849_s2 + $0xc8] sm:$0xff]  ;;  %v631_v2 = vld [vmem:[%s4849_s2 + $0xc0] sm:$0xff] }
 0x108   : > { %v3428_v4 = vpop.f32.mrb[6].mxu0  ;;  %3708 = vmatpush1.bf16.msra.mxu0 %v3707_v3  ;;  %3786 = vmatpush1.bf16.msra.mxu1 %v3707_v3  ;;  %v634_v3 = vld [vmem:[%s4849_s2 + $0xd8] sm:$0xff] }
 0x109   : > { %v478_v5 = vpop.f32.mrb[7].mxu0  ;;  %3709 = vmatprep.subr.bf16.mxu0 %v3898_v56  ;;  %3771 = vmatprep.subr.bf16.mxu1 %v3898_v56 }
 0x10a   : > { %v3710_v6 = vpack.c.bf16 %v3428_v4, %v478_v5  ;;  %v633_v4 = vld [vmem:[%s4849_s2 + $0xd0] sm:$0xff]  ;;  %v636_v5 = vld [vmem:[%s4849_s2 + $0xe8] sm:$0xff] }
 0x10c   : > { %v3431_v7 = vpop.f32.mrb[8].mxu0  ;;  %3711 = vmatpush1.bf16.msra.mxu0 %v3710_v6  ;;  %3787 = vmatpush1.bf16.msra.mxu1 %v3710_v6  ;;  %v635_v6 = vld [vmem:[%s4849_s2 + $0xe0] sm:$0xff] }
 0x10d   : > { %v488_v8 = vpop.f32.mrb[9].mxu0  ;;  %3712 = vmatprep.subr.bf16.mxu0 %v3898_v56  ;;  %3772 = vmatprep.subr.bf16.mxu1 %v3898_v56 }
 0x10e   : > { %v3713_v9 = vpack.c.bf16 %v3431_v7, %v488_v8  ;;  %v638_v7 = vld [vmem:[%s4849_s2 + $0xf8] sm:$0xff]  ;;  %v637_v8 = vld [vmem:[%s4849_s2 + $0xf0] sm:$0xff] }
 0x110   : > { %v3434_v10 = vpop.f32.mrb[10].mxu0  ;;  %3714 = vmatpush1.bf16.msra.mxu0 %v3713_v9  ;;  %3788 = vmatpush1.bf16.msra.mxu1 %v3713_v9  ;;  %v640_v9 = vld [vmem:[%s4849_s2 + $0x108] sm:$0xff] }
 0x111   : > { %v498_v11 = vpop.f32.mrb[11].mxu0  ;;  %3715 = vmatprep.subr.bf16.mxu0 %v3898_v56  ;;  %3773 = vmatprep.subr.bf16.mxu1 %v3898_v56 }
 0x112   : > { %v3716_v12 = vpack.c.bf16 %v3434_v10, %v498_v11  ;;  %v639_v10 = vld [vmem:[%s4849_s2 + $0x100] sm:$0xff]  ;;  %v642_v11 = vld [vmem:[%s4849_s2 + $0x118] sm:$0xff] }
 0x114   : > { %v3437_v13 = vpop.f32.mrb[12].mxu0  ;;  %3717 = vmatpush1.bf16.msra.mxu0 %v3716_v12  ;;  %3789 = vmatpush1.bf16.msra.mxu1 %v3716_v12  ;;  %v641_v12 = vld [vmem:[%s4849_s2 + $0x110] sm:$0xff] }
 0x115   : > { %v508_v14 = vpop.f32.mrb[13].mxu0  ;;  %3718 = vmatprep.subr.bf16.mxu0 %v3898_v56  ;;  %3774 = vmatprep.subr.bf16.mxu1 %v3898_v56 }
 0x116   : > { %v3719_v15 = vpack.c.bf16 %v3437_v13, %v508_v14  ;;  %v644_v13 = vld [vmem:[%s4849_s2 + $0x128] sm:$0xff]  ;;  %v643_v14 = vld [vmem:[%s4849_s2 + $0x120] sm:$0xff] }
 0x118   : > { %v3440_v16 = vpop.f32.mrb[14].mxu0  ;;  %3720 = vmatpush1.bf16.msra.mxu0 %v3719_v15  ;;  %3790 = vmatpush1.bf16.msra.mxu1 %v3719_v15  ;;  %v646_v15 = vld [vmem:[%s4849_s2 + $0x138] sm:$0xff] }
 0x119   : > { %v518_v17 = vpop.f32.mrb[15].mxu0  ;;  %3721 = vmatprep.subr.bf16.mxu0 %v3898_v56  ;;  %3775 = vmatprep.subr.bf16.mxu1 %v3898_v56 }
 0x11a   : > { %v3722_v18 = vpack.c.bf16 %v3440_v16, %v518_v17  ;;  %v645_v16 = vld [vmem:[%s4849_s2 + $0x130] sm:$0xff]  ;;  %v648_v17 = vld [vmem:[%s4849_s2 + $0x148] sm:$0xff] }
 0x11c   : > { %v3443_v19 = vpop.f32.mrb[16].mxu0  ;;  %3723 = vmatpush1.bf16.msra.mxu0 %v3722_v18  ;;  %3791 = vmatpush1.bf16.msra.mxu1 %v3722_v18  ;;  %v647_v18 = vld [vmem:[%s4849_s2 + $0x140] sm:$0xff] }
 0x11d   : > { %v528_v20 = vpop.f32.mrb[17].mxu0  ;;  %3724 = vmatprep.subr.bf16.mxu0 %v3898_v56  ;;  %3776 = vmatprep.subr.bf16.mxu1 %v3898_v56 }
 0x11e   : > { %v3725_v21 = vpack.c.bf16 %v3443_v19, %v528_v20  ;;  %v650_v19 = vld [vmem:[%s4849_s2 + $0x158] sm:$0xff]  ;;  %v649_v20 = vld [vmem:[%s4849_s2 + $0x150] sm:$0xff] }
 0x120   : > { %v3446_v22 = vpop.f32.mrb[18].mxu0  ;;  %3726 = vmatpush1.bf16.msra.mxu0 %v3725_v21  ;;  %3792 = vmatpush1.bf16.msra.mxu1 %v3725_v21  ;;  %v652_v21 = vld [vmem:[%s4849_s2 + $0x168] sm:$0xff] }
 0x121   : > { %v538_v23 = vpop.f32.mrb[19].mxu0  ;;  %3727 = vmatprep.subr.bf16.mxu0 %v3898_v56  ;;  %3777 = vmatprep.subr.bf16.mxu1 %v3898_v56 }
 0x122   : > { %v3728_v24 = vpack.c.bf16 %v3446_v22, %v538_v23  ;;  %v651_v22 = vld [vmem:[%s4849_s2 + $0x160] sm:$0xff]  ;;  %v654_v23 = vld [vmem:[%s4849_s2 + $0x178] sm:$0xff] }
 0x124   : > { %v3449_v25 = vpop.f32.mrb[20].mxu0  ;;  %3729 = vmatpush1.bf16.msra.mxu0 %v3728_v24  ;;  %3793 = vmatpush1.bf16.msra.mxu1 %v3728_v24  ;;  %v653_v24 = vld [vmem:[%s4849_s2 + $0x170] sm:$0xff] }
 0x125   : > { %v548_v26 = vpop.f32.mrb[21].mxu0  ;;  %3730 = vmatprep.subr.bf16.mxu0 %v3898_v56  ;;  %3778 = vmatprep.subr.bf16.mxu1 %v3898_v56 }
 0x126   : > { %v3731_v27 = vpack.c.bf16 %v3449_v25, %v548_v26  ;;  %v656_v25 = vld [vmem:[%s4849_s2 + $0x188] sm:$0xff]  ;;  %v655_v26 = vld [vmem:[%s4849_s2 + $0x180] sm:$0xff] }
 0x128   : > { %v3452_v28 = vpop.f32.mrb[22].mxu0  ;;  %3732 = vmatpush1.bf16.msra.mxu0 %v3731_v27  ;;  %3794 = vmatpush1.bf16.msra.mxu1 %v3731_v27  ;;  %v658_v27 = vld [vmem:[%s4849_s2 + $0x198] sm:$0xff] }
 0x129   : > { %v558_v29 = vpop.f32.mrb[23].mxu0  ;;  %3733 = vmatprep.subr.bf16.mxu0 %v3898_v56  ;;  %3779 = vmatprep.subr.bf16.mxu1 %v3898_v56 }
 0x12a   : > { %v3734_v30 = vpack.c.bf16 %v3452_v28, %v558_v29  ;;  %v657_v28 = vld [vmem:[%s4849_s2 + $0x190] sm:$0xff]  ;;  %v660_v29 = vld [vmem:[%s4849_s2 + $0x1a8] sm:$0xff] }
 0x12c   : > { %v3455_v31 = vpop.f32.mrb[24].mxu0  ;;  %3735 = vmatpush1.bf16.msra.mxu0 %v3734_v30  ;;  %3795 = vmatpush1.bf16.msra.mxu1 %v3734_v30  ;;  %v659_v30 = vld [vmem:[%s4849_s2 + $0x1a0] sm:$0xff] }
 0x12d   : > { %v568_v32 = vpop.f32.mrb[25].mxu0  ;;  %3736 = vmatprep.subr.bf16.mxu0 %v3898_v56  ;;  %3780 = vmatprep.subr.bf16.mxu1 %v3898_v56 }
 0x12e   : > { %v3737_v33 = vpack.c.bf16 %v3455_v31, %v568_v32  ;;  %v662_v31 = vld [vmem:[%s4849_s2 + $0x1b8] sm:$0xff]  ;;  %v661_v32 = vld [vmem:[%s4849_s2 + $0x1b0] sm:$0xff] }
 0x130   : > { %v3458_v34 = vpop.f32.mrb[26].mxu0  ;;  %3738 = vmatpush1.bf16.msra.mxu0 %v3737_v33  ;;  %3796 = vmatpush1.bf16.msra.mxu1 %v3737_v33  ;;  %v664_v33 = vld [vmem:[%s4849_s2 + $0x1c8] sm:$0xff] }
 0x131   : > { %v578_v35 = vpop.f32.mrb[27].mxu0  ;;  %3739 = vmatprep.subr.bf16.mxu0 %v3898_v56  ;;  %3781 = vmatprep.subr.bf16.mxu1 %v3898_v56 }
 0x132   : > { %v3740_v36 = vpack.c.bf16 %v3458_v34, %v578_v35  ;;  %v663_v34 = vld [vmem:[%s4849_s2 + $0x1c0] sm:$0xff]  ;;  %v666_v35 = vld [vmem:[%s4849_s2 + $0x1d8] sm:$0xff] }
 0x134   : > { %v3461_v37 = vpop.f32.mrb[28].mxu0  ;;  %3741 = vmatpush1.bf16.msra.mxu0 %v3740_v36  ;;  %3797 = vmatpush1.bf16.msra.mxu1 %v3740_v36  ;;  %v665_v36 = vld [vmem:[%s4849_s2 + $0x1d0] sm:$0xff] }
 0x135   : > { %v588_v38 = vpop.f32.mrb[29].mxu0  ;;  %3742 = vmatprep.subr.bf16.mxu0 %v3898_v56  ;;  %3782 = vmatprep.subr.bf16.mxu1 %v3898_v56 }
 0x136   : > { %v3743_v39 = vpack.c.bf16 %v3461_v37, %v588_v38  ;;  %v668_v37 = vld [vmem:[%s4849_s2 + $0x1e8] sm:$0xff]  ;;  %v667_v38 = vld [vmem:[%s4849_s2 + $0x1e0] sm:$0xff] }
 0x138   : > { %v3464_v40 = vpop.f32.mrb[30].mxu0  ;;  %3744 = vmatpush1.bf16.msra.mxu0 %v3743_v39  ;;  %3798 = vmatpush1.bf16.msra.mxu1 %v3743_v39  ;;  %v670_v39 = vld [vmem:[%s4849_s2 + $0x1f8] sm:$0xff] }
 0x139   : > { %v598_v41 = vpop.f32.mrb[31].mxu0  ;;  %3745 = vmatprep.subr.bf16.mxu0 %v3898_v56  ;;  %3783 = vmatprep.subr.bf16.mxu1 %v3898_v56  ;;  %v613_v56 = vld [vmem:[%s4849_s2 + $0x30] sm:$0xff] }
 0x13a   : > { %v3746_v42 = vpack.c.bf16 %v3464_v40, %v598_v41  ;;  %v669_v40 = vld [vmem:[%s4849_s2 + $0x1f0] sm:$0xff]  ;;  %v672_v41 = vld [vmem:[%s4849_s2 + $0x208] sm:$0xff] }
 0x13c   : > { %3747 = vmatpush1.bf16.msra.mxu0 %v3746_v42  ;;  %3799 = vmatpush1.bf16.msra.mxu1 %v3746_v42  ;;  %v671_v42 = vld [vmem:[%s4849_s2 + $0x200] sm:$0xff] }
 0x13f   : > { %796 = vmatmul.mubr.f32.vlgmr.msra.gmra.mrb[0].mxu1 %v615_v43  ;;  %776 = vmatmul.mubr.f32.vlgmr.msra.gmra.mrb[32].mxu0 %v607_v44  ;;  %v674_v43 = vld [vmem:[%s4849_s2 + $0x218] sm:$0xff]  ;;  %v673_v44 = vld [vmem:[%s4849_s2 + $0x210] sm:$0xff] }
 0x140   : > { %800 = vmatprep.mubr.f32.mxu1 %v618_v45  ;;  %780 = vmatprep.mubr.f32.mxu0 %v610_v46  ;;  %v676_v45 = vld [vmem:[%s4849_s2 + $0x228] sm:$0xff]  ;;  %v675_v46 = vld [vmem:[%s4849_s2 + $0x220] sm:$0xff] }
 0x143   : > { %801 = vmatmul.mubr.f32.gmra.mrb[2].mxu1 %v617_v47  ;;  %781 = vmatmul.mubr.f32.gmra.mrb[34].mxu0 %v609_v48  ;;  %v678_v47 = vld [vmem:[%s4849_s2 + $0x238] sm:$0xff]  ;;  %v677_v48 = vld [vmem:[%s4849_s2 + $0x230] sm:$0xff] }
 0x144   : > { %805 = vmatprep.mubr.f32.mxu1 %v620_v49  ;;  %785 = vmatprep.mubr.f32.mxu0 %v612_v50  ;;  %v680_v49 = vld [vmem:[%s4849_s2 + $0x248] sm:$0xff]  ;;  %v679_v50 = vld [vmem:[%s4849_s2 + $0x240] sm:$0xff] }
 0x147   : > { %806 = vmatmul.mubr.f32.gmra.mrb[4].mxu1 %v619_v51  ;;  %786 = vmatmul.mubr.f32.gmra.mrb[36].mxu0 %v611_v52  ;;  %v682_v51 = vld [vmem:[%s4849_s2 + $0x258] sm:$0xff]  ;;  %v681_v52 = vld [vmem:[%s4849_s2 + $0x250] sm:$0xff] }
 0x148   : > { %810 = vmatprep.mubr.f32.mxu1 %v622_v53  ;;  %790 = vmatprep.mubr.f32.mxu0 %v614_v54  ;;  %v684_v53 = vld [vmem:[%s4849_s2 + $0x268] sm:$0xff]  ;;  %v683_v54 = vld [vmem:[%s4849_s2 + $0x260] sm:$0xff] }
 0x14b   : > { %811 = vmatmul.mubr.f32.gmra.mrb[6].mxu1 %v621_v55  ;;  %791 = vmatmul.mubr.f32.gmra.mrb[38].mxu0 %v613_v56  ;;  %v686_v55 = vld [vmem:[%s4849_s2 + $0x278] sm:$0xff]  ;;  %v685_v56 = vld [vmem:[%s4849_s2 + $0x270] sm:$0xff] }
 0x14c   : > { %815 = vmatprep.mubr.f32.mxu1 %v624_v57  ;;  %v688_v57 = vld [vmem:[%s4849_s2 + $0x288] sm:$0xff] }
 0x14f   : > { %816 = vmatmul.mubr.f32.gmra.mrb[8].mxu1 %v623_v58  ;;  %v687_v58 = vld [vmem:[%s4849_s2 + $0x280] sm:$0xff] }
 0x150   : > { %820 = vmatprep.mubr.f32.mxu1 %v626_v59  ;;  %v690_v59 = vld [vmem:[%s4849_s2 + $0x298] sm:$0xff] }
 0x153   : > { %821 = vmatmul.mubr.f32.gmra.mrb[10].mxu1 %v625_v60  ;;  %v689_v60 = vld [vmem:[%s4849_s2 + $0x290] sm:$0xff] }
 0x154   : > { %825 = vmatprep.mubr.f32.mxu1 %v628_v61  ;;  %v692_v61 = vld [vmem:[%s4849_s2 + $0x2a8] sm:$0xff] }
 0x157   : > { %826 = vmatmul.mubr.f32.gmra.mrb[12].mxu1 %v627_v62  ;;  %v691_v62 = vld [vmem:[%s4849_s2 + $0x2a0] sm:$0xff] }
 0x158   : > { %830 = vmatprep.mubr.f32.mxu1 %v630_v63  ;;  %v694_v63 = vld [vmem:[%s4849_s2 + $0x2b8] sm:$0xff] }
 0x15b   : > { %831 = vmatmul.mubr.f32.gmra.mrb[14].mxu1 %v629_v0  ;;  %v693_v0 = vld [vmem:[%s4849_s2 + $0x2b0] sm:$0xff] }
 0x15c   : > { %835 = vmatprep.mubr.f32.mxu1 %v632_v1  ;;  %v696_v1 = vld [vmem:[%s4849_s2 + $0x2c8] sm:$0xff] }
 0x15f   : > { %836 = vmatmul.mubr.f32.gmra.mrb[16].mxu1 %v631_v2  ;;  %v695_v2 = vld [vmem:[%s4849_s2 + $0x2c0] sm:$0xff] }
 0x160   : > { %840 = vmatprep.mubr.f32.mxu1 %v634_v3  ;;  %v698_v3 = vld [vmem:[%s4849_s2 + $0x2d8] sm:$0xff] }
 0x163   : > { %841 = vmatmul.mubr.f32.gmra.mrb[18].mxu1 %v633_v4  ;;  %v697_v4 = vld [vmem:[%s4849_s2 + $0x2d0] sm:$0xff] }
 0x164   : > { %845 = vmatprep.mubr.f32.mxu1 %v636_v5  ;;  %v700_v5 = vld [vmem:[%s4849_s2 + $0x2e8] sm:$0xff] }
 0x167   : > { %846 = vmatmul.mubr.f32.gmra.mrb[20].mxu1 %v635_v6  ;;  %v699_v6 = vld [vmem:[%s4849_s2 + $0x2e0] sm:$0xff] }
 0x168   : > { %850 = vmatprep.mubr.f32.mxu1 %v638_v7  ;;  %v702_v7 = vld [vmem:[%s4849_s2 + $0x2f8] sm:$0xff] }
 0x16b   : > { %851 = vmatmul.mubr.f32.gmra.mrb[22].mxu1 %v637_v8  ;;  %v701_v8 = vld [vmem:[%s4849_s2 + $0x2f0] sm:$0xff] }
 0x16c   : > { %855 = vmatprep.mubr.f32.mxu1 %v640_v9  ;;  %v704_v9 = vld [vmem:[%s4849_s2 + $0x308] sm:$0xff] }
 0x16f   : > { %856 = vmatmul.mubr.f32.gmra.mrb[24].mxu1 %v639_v10  ;;  %v703_v10 = vld [vmem:[%s4849_s2 + $0x300] sm:$0xff] }
 0x170   : > { %860 = vmatprep.mubr.f32.mxu1 %v642_v11  ;;  %v706_v11 = vld [vmem:[%s4849_s2 + $0x318] sm:$0xff] }
 0x173   : > { %861 = vmatmul.mubr.f32.gmra.mrb[26].mxu1 %v641_v12  ;;  %v705_v12 = vld [vmem:[%s4849_s2 + $0x310] sm:$0xff] }
 0x174   : > { %865 = vmatprep.mubr.f32.mxu1 %v644_v13  ;;  %v708_v13 = vld [vmem:[%s4849_s2 + $0x328] sm:$0xff] }
 0x177   : > { %866 = vmatmul.mubr.f32.gmra.mrb[28].mxu1 %v643_v14  ;;  %v707_v14 = vld [vmem:[%s4849_s2 + $0x320] sm:$0xff] }
 0x178   : > { %870 = vmatprep.mubr.f32.mxu1 %v646_v15  ;;  %v710_v15 = vld [vmem:[%s4849_s2 + $0x338] sm:$0xff] }
 0x17b   : > { %871 = vmatmul.mubr.f32.gmra.mrb[30].mxu1 %v645_v16  ;;  %v709_v16 = vld [vmem:[%s4849_s2 + $0x330] sm:$0xff] }
 0x17c   : > { %875 = vmatprep.mubr.f32.mxu1 %v648_v17 }
 0x17f   : > { %876 = vmatmul.mubr.f32.gmra.mrb[32].mxu1 %v647_v18 }
 0x180   : > { %880 = vmatprep.mubr.f32.mxu1 %v650_v19 }
 0x183   : > { %881 = vmatmul.mubr.f32.gmra.mrb[34].mxu1 %v649_v20 }
 0x184   : > { %885 = vmatprep.mubr.f32.mxu1 %v652_v21 }
 0x187   : > { %886 = vmatmul.mubr.f32.gmra.mrb[36].mxu1 %v651_v22 }
 0x188   : > { %890 = vmatprep.mubr.f32.mxu1 %v654_v23 }
 0x18b   : > { %891 = vmatmul.mubr.f32.gmra.mrb[38].mxu1 %v653_v24 }
 0x18c   : > { %895 = vmatprep.mubr.f32.mxu1 %v656_v25 }
 0x18f   : > { %896 = vmatmul.mubr.f32.gmra.mrb[40].mxu1 %v655_v26 }
 0x190   : > { %900 = vmatprep.mubr.f32.mxu1 %v658_v27 }
 0x193   : > { %901 = vmatmul.mubr.f32.gmra.mrb[42].mxu1 %v657_v28 }
 0x194   : > { %905 = vmatprep.mubr.f32.mxu1 %v660_v29 }
 0x197   : > { %906 = vmatmul.mubr.f32.gmra.mrb[44].mxu1 %v659_v30 }
 0x198   : > { %910 = vmatprep.mubr.f32.mxu1 %v662_v31 }
 0x19b   : > { %911 = vmatmul.mubr.f32.gmra.mrb[46].mxu1 %v661_v32 }
 0x19c   : > { %915 = vmatprep.mubr.f32.mxu1 %v664_v33 }
 0x19f   : > { %916 = vmatmul.mubr.f32.gmra.mrb[48].mxu1 %v663_v34 }
 0x1a0   : > { %920 = vmatprep.mubr.f32.mxu1 %v666_v35 }
 0x1a3   : > { %921 = vmatmul.mubr.f32.gmra.mrb[50].mxu1 %v665_v36 }
 0x1a4   : > { %925 = vmatprep.mubr.f32.mxu1 %v668_v37 }
 0x1a7   : > { %926 = vmatmul.mubr.f32.gmra.mrb[52].mxu1 %v667_v38 }
 0x1a8   : > { %930 = vmatprep.mubr.f32.mxu1 %v670_v39 }
 0x1ab   : > { %931 = vmatmul.mubr.f32.gmra.mrb[54].mxu1 %v669_v40 }
 0x1ac   : > { %935 = vmatprep.mubr.f32.mxu1 %v672_v41 }
 0x1af   : > { %936 = vmatmul.mubr.f32.gmra.mrb[56].mxu1 %v671_v42 }
 0x1b0   : > { %940 = vmatprep.mubr.f32.mxu1 %v674_v43  ;;  %v1149_v43 = vld [vmem:[%s4851_s4 + $0x8] sm:$0xff] }
 0x1b1   : > { %3465 = vmatprep.subr.mxu0 %v1149_v43 }
 0x1b2   : > { %3466 = vmatpush3.msra.mxu0 %v1149_v43 }
 0x1b3   : > { %941 = vmatmul.mubr.f32.gmra.mrb[58].mxu1 %v673_v44 }
 0x1b4   : > { %945 = vmatprep.mubr.f32.mxu1 %v676_v45 }
 0x1b7   : > { %946 = vmatmul.mubr.f32.gmra.mrb[60].mxu1 %v675_v46 }
 0x1b8   : > { %950 = vmatprep.mubr.f32.mxu1 %v678_v47 }
 0x1bb   : > { %951 = vmatmul.mubr.f32.gmra.mrb[62].mxu1 %v677_v48 }
 0x1bc   : > { %955 = vmatprep.mubr.f32.mxu1 %v680_v49 }
 0x1bf   : > { %956 = vmatmul.mubr.f32.gmra.mrb[64].mxu1 %v679_v50 }
 0x1c0   : > { %960 = vmatprep.mubr.f32.mxu1 %v682_v51 }
 0x1c3   : > { %961 = vmatmul.mubr.f32.gmra.mrb[66].mxu1 %v681_v52 }
 0x1c4   : > { %965 = vmatprep.mubr.f32.mxu1 %v684_v53 }
 0x1c7   : > { %966 = vmatmul.mubr.f32.gmra.mrb[68].mxu1 %v683_v54 }
 0x1c8   : > { %970 = vmatprep.mubr.f32.mxu1 %v686_v55 }
 0x1cb   : > { %971 = vmatmul.mubr.f32.gmra.mrb[70].mxu1 %v685_v56 }
 0x1cc   : > { %975 = vmatprep.mubr.f32.mxu1 %v688_v57 }
 0x1cf   : > { %976 = vmatmul.mubr.f32.gmra.mrb[72].mxu1 %v687_v58 }
 0x1d0   : > { %980 = vmatprep.mubr.f32.mxu1 %v690_v59 }
 0x1d3   : > { %981 = vmatmul.mubr.f32.gmra.mrb[74].mxu1 %v689_v60 }
 0x1d4   : > { %985 = vmatprep.mubr.f32.mxu1 %v692_v61 }
 0x1d7   : > { %986 = vmatmul.mubr.f32.gmra.mrb[76].mxu1 %v691_v62 }
 0x1d8   : > { %990 = vmatprep.mubr.f32.mxu1 %v694_v63 }
 0x1db   : > { %991 = vmatmul.mubr.f32.gmra.mrb[78].mxu1 %v693_v0 }
 0x1dc   : > { %995 = vmatprep.mubr.f32.mxu1 %v696_v1 }
 0x1df   : > { %996 = vmatmul.mubr.f32.gmra.mrb[80].mxu1 %v695_v2 }
 0x1e0   : > { %1000 = vmatprep.mubr.f32.mxu1 %v698_v3 }
 0x1e3   : > { %1001 = vmatmul.mubr.f32.gmra.mrb[82].mxu1 %v697_v4 }
 0x1e4   : > { %1005 = vmatprep.mubr.f32.mxu1 %v700_v5 }
 0x1e7   : > { %1006 = vmatmul.mubr.f32.gmra.mrb[84].mxu1 %v699_v6 }
 0x1e8   : > { %1010 = vmatprep.mubr.f32.mxu1 %v702_v7  ;;  %v4460_v7 = vld [vmem:[%s4851_s4] sm:$0xff] }
 0x1e9   : > { %3482 = vmatprep.subr.mxu0 %v4460_v7 }
 0x1eb   : > { %1011 = vmatmul.mubr.f32.gmra.mrb[86].mxu1 %v701_v8 }
 0x1ec   : > { %1015 = vmatprep.mubr.f32.mxu1 %v704_v9 }
 0x1ef   : > { %1016 = vmatmul.mubr.f32.gmra.mrb[88].mxu1 %v703_v10 }
 0x1f0   : > { %1020 = vmatprep.mubr.f32.mxu1 %v706_v11 }
 0x1f3   : > { %1021 = vmatmul.mubr.f32.gmra.mrb[90].mxu1 %v705_v12 }
 0x1f4   : > { %1025 = vmatprep.mubr.f32.mxu1 %v708_v13 }
 0x1f7   : > { %1026 = vmatmul.mubr.f32.gmra.mrb[92].mxu1 %v707_v14 }
 0x1f8   : > { %1030 = vmatprep.mubr.f32.mxu1 %v710_v15 }
 0x1fb   : > { %1031 = vmatmul.mubr.f32.gmra.mrb[94].mxu1 %v709_v16 }
 0x212   : > { %v4392_v17 = vpop.f32.mrb[0].mxu1  ;;  %v4394_v18 = vpop.f32.mrb[32].mxu0 }
 0x213   : > { %v799_v19 = vpop.f32.mrb[1].mxu1  ;;  %v779_v20 = vpop.f32.mrb[33].mxu0 }
 0x216   : > { %v4396_v21 = vpop.f32.mrb[2].mxu1  ;;  %v4398_v22 = vpop.f32.mrb[34].mxu0 }
 0x217   : > { %v804_v23 = vpop.f32.mrb[3].mxu1  ;;  %v784_v24 = vpop.f32.mrb[35].mxu0 }
 0x21a   : > { %v4400_v25 = vpop.f32.mrb[4].mxu1  ;;  %v4402_v26 = vpop.f32.mrb[36].mxu0 }
 0x21b   : > { %v809_v27 = vpop.f32.mrb[5].mxu1  ;;  %v789_v28 = vpop.f32.mrb[37].mxu0 }
 0x21e   : > { %v4404_v29 = vpop.f32.mrb[6].mxu1  ;;  %v4406_v30 = vpop.f32.mrb[38].mxu0 }
 0x21f   : > { %v814_v31 = vpop.f32.mrb[7].mxu1  ;;  %v794_v32 = vpop.f32.mrb[39].mxu0 }
 0x222   : > { %v4408_v33 = vpop.f32.mrb[8].mxu1 }
 0x223   : > { %v819_v34 = vpop.f32.mrb[9].mxu1 }
 0x226   : > { %v4410_v35 = vpop.f32.mrb[10].mxu1 }
 0x227   : > { %v824_v36 = vpop.f32.mrb[11].mxu1 }
 0x22a   : > { %v4412_v37 = vpop.f32.mrb[12].mxu1 }
 0x22b   : > { %v829_v38 = vpop.f32.mrb[13].mxu1 }
 0x22e   : > { %v4414_v39 = vpop.f32.mrb[14].mxu1 }
 0x22f   : > { %v834_v40 = vpop.f32.mrb[15].mxu1 }
 0x232   : > { %v4416_v41 = vpop.f32.mrb[16].mxu1 }
 0x233   : > { %v839_v42 = vpop.f32.mrb[17].mxu1 }
 0x236   : > { %v4421_v44 = vpop.f32.mrb[18].mxu1 }
 0x237   : > { %v1036_v45 = vmax.f32 %v4394_v18, %v4421_v44  ;;  %v844_v46 = vpop.f32.mrb[19].mxu1 }
 0x23a   : > { %v4425_v47 = vpop.f32.mrb[20].mxu1 }
 0x23b   : > { %v1037_v48 = vmax.f32 %v4398_v22, %v4425_v47  ;;  %v849_v49 = vpop.f32.mrb[21].mxu1 }
 0x23e   : > { %v4429_v50 = vpop.f32.mrb[22].mxu1 }
 0x23f   : > { %v1038_v51 = vmax.f32 %v4402_v26, %v4429_v50  ;;  %v854_v52 = vpop.f32.mrb[23].mxu1 }
 0x242   : > { %v4433_v53 = vpop.f32.mrb[24].mxu1 }
 0x243   : > { %v1039_v54 = vmax.f32 %v4406_v30, %v4433_v53  ;;  %v859_v55 = vpop.f32.mrb[25].mxu1 }
 0x246   : > { %v4437_v56 = vpop.f32.mrb[26].mxu1 }
 0x247   : > { %v1040_v57 = vmax.f32 %v4392_v17, %v4437_v56  ;;  %v864_v58 = vpop.f32.mrb[27].mxu1 }
 0x24a   : > { %v4441_v59 = vpop.f32.mrb[28].mxu1 }
 0x24b   : > { %v1041_v60 = vmax.f32 %v4396_v21, %v4441_v59  ;;  %v869_v61 = vpop.f32.mrb[29].mxu1  ;;  %v1081_v21 = vld [vmem:[%s4850_s3 + $0x30] sm:$0xff] }
 0x24e   : > { %v4445_v62 = vpop.f32.mrb[30].mxu1 }
 0x24f   : > { %v1042_v63 = vmax.f32 %v4400_v25, %v4445_v62  ;;  %v874_v0 = vpop.f32.mrb[31].mxu1 }
 0x252   : > { %v4449_v1 = vpop.f32.mrb[32].mxu1 }
 0x253   : > { %v1043_v2 = vmax.f32 %v4404_v29, %v4449_v1  ;;  %v879_v3 = vpop.f32.mrb[33].mxu1 }
 0x256   : > { %v4453_v4 = vpop.f32.mrb[34].mxu1 }
 0x257   : > { %v1044_v5 = vmax.f32 %v4408_v33, %v4453_v4  ;;  %v884_v6 = vpop.f32.mrb[35].mxu1 }
 0x25a   : > { %v4463_v8 = vpop.f32.mrb[36].mxu1 }
 0x25b   : > { %v1045_v9 = vmax.f32 %v4410_v35, %v4463_v8  ;;  %v889_v10 = vpop.f32.mrb[37].mxu1 }
 0x25e   : > { %v4467_v11 = vpop.f32.mrb[38].mxu1 }
 0x25f   : > { %v1046_v12 = vmax.f32 %v4412_v37, %v4467_v11  ;;  %v894_v13 = vpop.f32.mrb[39].mxu1 }
 0x262   : > { %v4471_v14 = vpop.f32.mrb[40].mxu1 }
 0x263   : > { %v1047_v15 = vmax.f32 %v4414_v39, %v4471_v14  ;;  %v899_v16 = vpop.f32.mrb[41].mxu1 }
 0x266   : > { %v4475_v19 = vpop.f32.mrb[42].mxu1 }
 0x267   : > { %v1048_v20 = vmax.f32 %v4416_v41, %v4475_v19  ;;  %v904_v23 = vpop.f32.mrb[43].mxu1  ;;  %v1616_v41 = vld [vmem:[%s4851_s4 + $0x18] sm:$0xff] }
 0x26a   : > { %v907_v24 = vpop.f32.mrb[44].mxu1 }
 0x26b   : > { %v909_v27 = vpop.f32.mrb[45].mxu1 }
 0x26e   : > { %v912_v28 = vpop.f32.mrb[46].mxu1 }
 0x26f   : > { %v914_v31 = vpop.f32.mrb[47].mxu1 }
 0x272   : > { %v917_v32 = vpop.f32.mrb[48].mxu1 }
 0x273   : > { %v919_v34 = vpop.f32.mrb[49].mxu1 }
 0x276   : > { %v922_v36 = vpop.f32.mrb[50].mxu1 }
 0x277   : > { %v924_v38 = vpop.f32.mrb[51].mxu1 }
 0x27a   : > { %v927_v40 = vpop.f32.mrb[52].mxu1 }
 0x27b   : > { %v929_v42 = vpop.f32.mrb[53].mxu1 }
 0x27e   : > { %v4479_v43 = vpop.f32.mrb[54].mxu1 }
 0x27f   : > { %v934_v46 = vpop.f32.mrb[55].mxu1 }
 0x280   : > { %v1075_v46 = vld [vmem:[%s4850_s3] sm:$0xff] }
 0x282   : > { %v4481_v49 = vpop.f32.mrb[56].mxu1 }
 0x283   : > { %v939_v52 = vpop.f32.mrb[57].mxu1 }
 0x286   : > { %v4483_v55 = vpop.f32.mrb[58].mxu1 }
 0x287   : > { %v944_v58 = vpop.f32.mrb[59].mxu1 }
 0x28a   : > { %v4485_v61 = vpop.f32.mrb[60].mxu1 }
 0x28b   : > { %v949_v0 = vpop.f32.mrb[61].mxu1 }
 0x28e   : > { %v4487_v3 = vpop.f32.mrb[62].mxu1 }
 0x28f   : > { %v954_v6 = vpop.f32.mrb[63].mxu1 }
 0x292   : > { %v4489_v10 = vpop.f32.mrb[64].mxu1 }
 0x293   : > { %v959_v13 = vpop.f32.mrb[65].mxu1 }
 0x296   : > { %v4491_v16 = vpop.f32.mrb[66].mxu1 }
 0x297   : > { %v964_v23 = vpop.f32.mrb[67].mxu1 }
 0x298   : > { %v1076_v23 = vld [vmem:[%s4850_s3 + $0x8] sm:$0xff] }
 0x29a   : > { %v4493_v27 = vpop.f32.mrb[68].mxu1 }
 0x29b   : > { %v969_v31 = vpop.f32.mrb[69].mxu1 }
 0x29e   : > { %v972_v34 = vpop.f32.mrb[70].mxu1 }
 0x29f   : > { %v1049_v38 = vmax.f32 %v907_v24, %v972_v34  ;;  %v974_v42 = vpop.f32.mrb[71].mxu1 }
 0x2a1   : > { %v1062_v52 = vmax.f32 %v1036_v45, %v1049_v38  ;;  %v1077_v45 = vld [vmem:[%s4850_s3 + $0x10] sm:$0xff] }
 0x2a2   : > { %v977_v58 = vpop.f32.mrb[72].mxu1 }
 0x2a3   : > { %v1088_v0 = vadd.f32 %v1075_v46, %v1062_v52  ;;  %v1050_v6 = vmax.f32 %v912_v28, %v977_v58  ;;  %v979_v13 = vpop.f32.mrb[73].mxu1 }
 0x2a5   : > { %v1101_v31 = vmax.f32 %v1088_v0, 0.0  ;;  %v1063_v24 = vmax.f32 %v1037_v48, %v1050_v6 }
 0x2a6   : > { %v982_v34 = vpop.f32.mrb[74].mxu1 }
 0x2a7   : > { %1115 = vst.msk [vmem:[#allocation2] sm:$0xff] %vm1114_vm0, %v1101_v31  ;;  %v1089_v42 = vadd.f32 %v1076_v23, %v1063_v24  ;;  %v1051_v18 = vmax.f32 %v917_v32, %v982_v34  ;;  %v984_v44 = vpop.f32.mrb[75].mxu1  ;;  %v1078_v32 = vld [vmem:[%s4850_s3 + $0x18] sm:$0xff]  ;;  %v4540_v34 = vld [vmem:[%s4851_s4 + $0x10] sm:$0xff] }
 0x2a9   : > { %v1102_v28 = vmax.f32 %v1089_v42, 0.0  ;;  %v1064_v38 = vmax.f32 %v1038_v51, %v1051_v18 }
 0x2aa   : > { %v987_v46 = vpop.f32.mrb[76].mxu1 }
 0x2ab   : > { %1116 = vst.msk [vmem:[#allocation2 + $0x8] sm:$0xff] %vm1114_vm0, %v1102_v28  ;;  %v1090_v22 = vadd.f32 %v1077_v45, %v1064_v38  ;;  %v1052_v47 = vmax.f32 %v922_v36, %v987_v46  ;;  %v989_v48 = vpop.f32.mrb[77].mxu1  ;;  %v1079_v36 = vld [vmem:[%s4850_s3 + $0x20] sm:$0xff] }
 0x2ac   : > { %v1083_v48 = vld [vmem:[%s4850_s3 + $0x40] sm:$0xff] }
 0x2ad   : > { %v1103_v52 = vmax.f32 %v1090_v22, 0.0  ;;  %v1065_v58 = vmax.f32 %v1039_v54, %v1052_v47 }
 0x2ae   : > { %v992_v0 = vpop.f32.mrb[78].mxu1 }
 0x2af   : > { %1117 = vst.msk [vmem:[#allocation2 + $0x10] sm:$0xff] %vm1114_vm0, %v1103_v52  ;;  %v1091_v26 = vadd.f32 %v1078_v32, %v1065_v58  ;;  %v1053_v50 = vmax.f32 %v927_v40, %v992_v0  ;;  %v994_v51 = vpop.f32.mrb[79].mxu1  ;;  %v1080_v40 = vld [vmem:[%s4850_s3 + $0x28] sm:$0xff] }
 0x2b0   : > { %v1084_v0 = vld [vmem:[%s4850_s3 + $0x48] sm:$0xff] }
 0x2b1   : > { %v1104_v6 = vmax.f32 %v1091_v26, 0.0  ;;  %v1066_v13 = vmax.f32 %v1040_v57, %v1053_v50 }
 0x2b2   : > { %v997_v23 = vpop.f32.mrb[80].mxu1  ;;  %v1139_v31 = vld [vmem:[#allocation2 + $0x1] sm:$0xff] }
 0x2b3   : > { %1118 = vst.msk [vmem:[#allocation2 + $0x18] sm:$0xff] %vm1114_vm0, %v1104_v6  ;;  %v1092_v30 = vadd.f32 %v1079_v36, %v1066_v13  ;;  %v1054_v53 = vmax.f32 %v4479_v43, %v997_v23  ;;  %v999_v54 = vpop.f32.mrb[81].mxu1  ;;  %3467 = vmatprep.mubr.msk.f32.mxu0 %vm1114_vm0, %v1139_v31  ;;  %v1085_v36 = vld [vmem:[%s4850_s3 + $0x50] sm:$0xff]  ;;  %v1086_v31 = vld [vmem:[%s4850_s3 + $0x58] sm:$0xff] }
 0x2b5   : > { %v1105_v24 = vmax.f32 %v1092_v30, 0.0  ;;  %v1067_v17 = vmax.f32 %v1041_v60, %v1054_v53 }
 0x2b6   : > { %v1002_v56 = vpop.f32.mrb[82].mxu1  ;;  %v1140_v57 = vld [vmem:[#allocation2 + $0x9] sm:$0xff] }
 0x2b7   : > { %1119 = vst.msk [vmem:[#allocation2 + $0x20] sm:$0xff] %vm1114_vm0, %v1105_v24  ;;  %v1093_v43 = vadd.f32 %v1080_v40, %v1067_v17  ;;  %v1055_v42 = vmax.f32 %v4481_v49, %v1002_v56  ;;  %v1004_v18 = vpop.f32.mrb[83].mxu1  ;;  %3468 = vmatmul.mubr.msk.f32.vlgmr.msra.gmra.mrb[40].mxu0 %vm1114_vm0, %v1140_v57  ;;  %v1087_v40 = vld [vmem:[%s4850_s3 + $0x60] sm:$0xff]  ;;  %v1129_v57 = vld [vmem:[#allocation2 + $0x8] sm:$0xff]  ;;  %v1130_v19 = vld [vmem:[#allocation2 + $0x10] sm:$0xff] }
 0x2b8   : > { %3483 = vmatpush3.msra.mxu0 %v4460_v7  ;;  %v1082_v7 = vld [vmem:[%s4850_s3 + $0x38] sm:$0xff]  ;;  %v1128_v56 = vld [vmem:[#allocation2] sm:$0xff] }
 0x2b9   : > { %v1106_v59 = vmax.f32 %v1093_v43, 0.0  ;;  %v1068_v60 = vmax.f32 %v1042_v63, %v1055_v42  ;;  %3499 = vmatprep.subr.mxu0 %v4540_v34 }
 0x2ba   : > { %v1007_v44 = vpop.f32.mrb[84].mxu1  ;;  %v1141_v45 = vld [vmem:[#allocation2 + $0x11] sm:$0xff] }
 0x2bb   : > { %1120 = vst.msk [vmem:[#allocation2 + $0x28] sm:$0xff] %vm1114_vm0, %v1106_v59  ;;  %v1094_v49 = vadd.f32 %v1081_v21, %v1068_v60  ;;  %v1056_v28 = vmax.f32 %v4483_v55, %v1007_v44  ;;  %v1009_v38 = vpop.f32.mrb[85].mxu1  ;;  %3470 = vmatprep.mubr.msk.f32.mxu0 %vm1114_vm0, %v1141_v45  ;;  %v1440_v60 = vld [vmem:[#allocation2 + $0x2] sm:$0xff]  ;;  %v1441_v44 = vld [vmem:[#allocation2 + $0xa] sm:$0xff] }
 0x2bc   : > { %v1782_v45 = vld [vmem:[%s4851_s4 + $0x20] sm:$0xff] }
 0x2bd   : > { %v1107_v46 = vmax.f32 %v1094_v49, 0.0  ;;  %v1069_v25 = vmax.f32 %v1043_v2, %v1056_v28  ;;  %v1442_v49 = vld [vmem:[#allocation2 + $0x12] sm:$0xff] }
 0x2be   : > { %v1012_v62 = vpop.f32.mrb[86].mxu1  ;;  %v1142_v63 = vld [vmem:[#allocation2 + $0x19] sm:$0xff] }
 0x2bf   : > { %1121 = vst.msk [vmem:[#allocation2 + $0x30] sm:$0xff] %vm1114_vm0, %v1107_v46  ;;  %v1095_v22 = vadd.f32 %v1082_v7, %v1069_v25  ;;  %v1057_v47 = vmax.f32 %v4485_v61, %v1012_v62  ;;  %v1014_v55 = vpop.f32.mrb[87].mxu1  ;;  %3471 = vmatmul.mubr.msk.f32.gmra.mrb[42].mxu0 %vm1114_vm0, %v1142_v63  ;;  %v1132_v43 = vld [vmem:[#allocation2 + $0x20] sm:$0xff] }
 0x2c0   : > { %v1443_v28 = vld [vmem:[#allocation2 + $0x1a] sm:$0xff]  ;;  %v1772_v55 = vld [vmem:[#allocation2 + $0xb] sm:$0xff] }
 0x2c1   : > { %v1108_v32 = vmax.f32 %v1095_v22, 0.0  ;;  %v1070_v29 = vmax.f32 %v1044_v5, %v1057_v47  ;;  %v1948_v22 = vld [vmem:[%s4851_s4 + $0x28] sm:$0xff] }
 0x2c2   : > { %v1017_v1 = vpop.f32.mrb[88].mxu1  ;;  %v1143_v2 = vld [vmem:[#allocation2 + $0x21] sm:$0xff] }
 0x2c3   : > { %1122 = vst.msk [vmem:[#allocation2 + $0x38] sm:$0xff] %vm1114_vm0, %v1108_v32  ;;  %v1096_v52 = vadd.f32 %v1083_v48, %v1070_v29  ;;  %v1058_v58 = vmax.f32 %v4487_v3, %v1017_v1  ;;  %v1019_v61 = vpop.f32.mrb[89].mxu1  ;;  %3473 = vmatprep.mubr.msk.f32.mxu0 %vm1114_vm0, %v1143_v2  ;;  %v1133_v42 = vld [vmem:[#allocation2 + $0x28] sm:$0xff]  ;;  %v1773_v48 = vld [vmem:[#allocation2 + $0x13] sm:$0xff]  ;;  %v1774_v29 = vld [vmem:[#allocation2 + $0x1b] sm:$0xff] }
 0x2c4   : > { %v1444_v38 = vld [vmem:[#allocation2 + $0x22] sm:$0xff]  ;;  %v2114_v32 = vld [vmem:[%s4851_s4 + $0x30] sm:$0xff] }
 0x2c5   : > { %v1109_v26 = vmax.f32 %v1096_v52, 0.0  ;;  %v1071_v33 = vmax.f32 %v1045_v9, %v1058_v58  ;;  %v1775_v1 = vld [vmem:[#allocation2 + $0x23] sm:$0xff] }
 0x2c6   : > { %v1022_v4 = vpop.f32.mrb[90].mxu1  ;;  %v1144_v5 = vld [vmem:[#allocation2 + $0x29] sm:$0xff] }
 0x2c7   : > { %1123 = vst.msk [vmem:[#allocation2 + $0x40] sm:$0xff] %vm1114_vm0, %v1109_v26  ;;  %v1097_v50 = vadd.f32 %v1084_v0, %v1071_v33  ;;  %v1059_v51 = vmax.f32 %v4489_v10, %v1022_v4  ;;  %v1024_v3 = vpop.f32.mrb[91].mxu1  ;;  %3474 = vmatmul.mubr.msk.f32.gmra.mrb[44].mxu0 %vm1114_vm0, %v1144_v5  ;;  %v1134_v18 = vld [vmem:[#allocation2 + $0x30] sm:$0xff]  ;;  %v2280_v5 = vld [vmem:[%s4851_s4 + $0x38] sm:$0xff] }
 0x2c8   : > { %v1445_v7 = vld [vmem:[#allocation2 + $0x2a] sm:$0xff]  ;;  %v1939_v4 = vld [vmem:[#allocation2 + $0x14] sm:$0xff] }
 0x2c9   : > { %v1110_v6 = vmax.f32 %v1097_v50, 0.0  ;;  %v1072_v35 = vmax.f32 %v1046_v12, %v1059_v51  ;;  %v1776_v2 = vld [vmem:[#allocation2 + $0x2b] sm:$0xff]  ;;  %v1940_v50 = vld [vmem:[#allocation2 + $0x1c] sm:$0xff] }
 0x2ca   : > { %v1027_v8 = vpop.f32.mrb[92].mxu1  ;;  %v1145_v9 = vld [vmem:[#allocation2 + $0x31] sm:$0xff]  ;;  %v1941_v51 = vld [vmem:[#allocation2 + $0x24] sm:$0xff] }
 0x2cb   : > { %1124 = vst.msk [vmem:[#allocation2 + $0x48] sm:$0xff] %vm1114_vm0, %v1110_v6  ;;  %v1098_v13 = vadd.f32 %v1085_v36, %v1072_v35  ;;  %v1060_v23 = vmax.f32 %v4491_v16, %v1027_v8  ;;  %3476 = vmatprep.mubr.msk.f32.mxu0 %vm1114_vm0, %v1145_v9  ;;  %v1029_v10 = vpop.f32.mrb[93].mxu1  ;;  %v1135_v21 = vld [vmem:[#allocation2 + $0x38] sm:$0xff]  ;;  %v1938_v33 = vld [vmem:[#allocation2 + $0xc] sm:$0xff] }
 0x2cc   : > { %v1446_v46 = vld [vmem:[#allocation2 + $0x32] sm:$0xff] }
 0x2cd   : > { %v1111_v30 = vmax.f32 %v1098_v13, 0.0  ;;  %v1073_v37 = vmax.f32 %v1047_v15, %v1060_v23  ;;  %v1777_v52 = vld [vmem:[#allocation2 + $0x33] sm:$0xff]  ;;  %v2446_v13 = vld [vmem:[%s4851_s4 + $0x40] sm:$0xff] }
 0x2ce   : > { %v1032_v11 = vpop.f32.mrb[94].mxu1  ;;  %v1146_v12 = vld [vmem:[#allocation2 + $0x39] sm:$0xff]  ;;  %v1942_v3 = vld [vmem:[#allocation2 + $0x2c] sm:$0xff] }
 0x2cf   : > { %1125 = vst.msk [vmem:[#allocation2 + $0x50] sm:$0xff] %vm1114_vm0, %v1111_v30  ;;  %v1099_v53 = vadd.f32 %v1086_v31, %v1073_v37  ;;  %v1061_v54 = vmax.f32 %v4493_v27, %v1032_v11  ;;  %3477 = vmatmul.mubr.msk.f32.gmra.mrb[46].mxu0 %vm1114_vm0, %v1146_v12  ;;  %v1034_v16 = vpop.f32.mrb[95].mxu1  ;;  %v1136_v59 = vld [vmem:[#allocation2 + $0x40] sm:$0xff]  ;;  %v1943_v36 = vld [vmem:[#allocation2 + $0x34] sm:$0xff] }
 0x2d0   : > { %v1447_v25 = vld [vmem:[#allocation2 + $0x3a] sm:$0xff]  ;;  %v2272_v30 = vld [vmem:[#allocation2 + $0x25] sm:$0xff]  ;;  %v2273_v37 = vld [vmem:[#allocation2 + $0x2d] sm:$0xff] }
 0x2d1   : > { %v1112_v24 = vmax.f32 %v1099_v53, 0.0  ;;  %v1074_v39 = vmax.f32 %v1048_v20, %v1061_v54  ;;  %v1131_v20 = vld [vmem:[#allocation2 + $0x18] sm:$0xff] }
 0x2d2   : > { %v1147_v14 = vld [vmem:[#allocation2 + $0x41] sm:$0xff]  ;;  %v2270_v10 = vld [vmem:[#allocation2 + $0x15] sm:$0xff] }
 0x2d3   : > { %1126 = vst.msk [vmem:[#allocation2 + $0x58] sm:$0xff] %vm1114_vm0, %v1112_v24  ;;  %v1100_v15 = vadd.f32 %v1087_v40, %v1074_v39  ;;  %3479 = vmatprep.mubr.msk.f32.mxu0 %vm1114_vm0, %v1147_v14  ;;  %v1448_v62 = vld [vmem:[#allocation2 + $0x42] sm:$0xff]  ;;  %v2274_v11 = vld [vmem:[#allocation2 + $0x35] sm:$0xff] }
 0x2d4   : > { %v1778_v58 = vld [vmem:[#allocation2 + $0x3b] sm:$0xff]  ;;  %v1779_v61 = vld [vmem:[#allocation2 + $0x43] sm:$0xff] }
 0x2d5   : > { %v1113_v17 = vmax.f32 %v1100_v15, 0.0  ;;  %v1944_v6 = vld [vmem:[#allocation2 + $0x3c] sm:$0xff]  ;;  %v1945_v35 = vld [vmem:[#allocation2 + $0x44] sm:$0xff]  ;;  %v2439_v15 = vld [vmem:[#allocation2 + $0x2e] sm:$0xff] }
 0x2d6   : > { %v1148_v27 = vld [vmem:[#allocation2 + $0x49] sm:$0xff]  ;;  %v2271_v31 = vld [vmem:[#allocation2 + $0x1d] sm:$0xff] }
 0x2d7   : > { %1127 = vst.msk [vmem:[#allocation2 + $0x60] sm:$0xff] %vm1114_vm0, %v1113_v17  ;;  %3480 = vmatmul.mubr.msk.f32.gmra.mrb[48].mxu0 %vm1114_vm0, %v1148_v27  ;;  %v1449_v63 = vld [vmem:[#allocation2 + $0x4a] sm:$0xff]  ;;  %v2275_v12 = vld [vmem:[#allocation2 + $0x3d] sm:$0xff] }
 0x2d8   : > { %3484 = vmatprep.mubr.msk.f32.mxu0 %vm1114_vm0, %v1128_v56  ;;  %v1780_v0 = vld [vmem:[#allocation2 + $0x4b] sm:$0xff]  ;;  %v2436_v24 = vld [vmem:[#allocation2 + $0x16] sm:$0xff]  ;;  %v2437_v39 = vld [vmem:[#allocation2 + $0x1e] sm:$0xff] }
 0x2d9   : > { %v1946_v8 = vld [vmem:[#allocation2 + $0x4c] sm:$0xff]  ;;  %v2440_v17 = vld [vmem:[#allocation2 + $0x36] sm:$0xff]  ;;  %v2441_v27 = vld [vmem:[#allocation2 + $0x3e] sm:$0xff] }
 0x2da   : > { %v1615_v47 = vld [vmem:[#allocation2 + $0x52] sm:$0xff]  ;;  %v2276_v53 = vld [vmem:[#allocation2 + $0x45] sm:$0xff] }
 0x2db   : > { %3485 = vmatmul.mubr.msk.f32.vlgmr.msra.gmra.mrb[40].mxu0 %vm1114_vm0, %v1129_v57  ;;  %v1781_v26 = vld [vmem:[#allocation2 + $0x53] sm:$0xff]  ;;  %v2438_v14 = vld [vmem:[#allocation2 + $0x26] sm:$0xff] }
 0x2dc   : > { %3487 = vmatprep.mubr.msk.f32.mxu0 %vm1114_vm0, %v1130_v19  ;;  %3500 = vmatpush3.msra.mxu0 %v4540_v34  ;;  %v1137_v34 = vld [vmem:[#allocation2 + $0x48] sm:$0xff]  ;;  %v1947_v9 = vld [vmem:[#allocation2 + $0x54] sm:$0xff] }
 0x2dd   : > { %3516 = vmatprep.subr.mxu0 %v1616_v41  ;;  %v2277_v54 = vld [vmem:[#allocation2 + $0x4d] sm:$0xff]  ;;  %v2278_v16 = vld [vmem:[#allocation2 + $0x55] sm:$0xff] }
 0x2de   : > { %v2113_v23 = vld [vmem:[#allocation2 + $0x5c] sm:$0xff]  ;;  %v2442_v56 = vld [vmem:[#allocation2 + $0x46] sm:$0xff]  ;;  %v2443_v57 = vld [vmem:[#allocation2 + $0x4e] sm:$0xff] }
 0x2df   : > { %3488 = vmatmul.mubr.msk.f32.gmra.mrb[42].mxu0 %vm1114_vm0, %v1131_v20  ;;  %v2279_v40 = vld [vmem:[#allocation2 + $0x5d] sm:$0xff] }
 0x2e0   : > { %3490 = vmatprep.mubr.msk.f32.mxu0 %vm1114_vm0, %v1132_v43  ;;  %v2445_v19 = vld [vmem:[#allocation2 + $0x5e] sm:$0xff] }
 0x2e1   : > { %v2602_v20 = vld [vmem:[%s4852_s5] sm:$0xff] }
 0x2e2   : > { %3638 = vmatprep.mubr.msk.f32.mxu1 %vm2622_vm1, %v2602_v20 }
 0x2e3   : > { %3491 = vmatmul.mubr.msk.f32.gmra.mrb[44].mxu0 %vm1114_vm0, %v1133_v42 }
 0x2e4   : > { %3493 = vmatprep.mubr.msk.f32.mxu0 %vm1114_vm0, %v1134_v18 }
 0x2e7   : > { %3494 = vmatmul.mubr.msk.f32.gmra.mrb[46].mxu0 %vm1114_vm0, %v1135_v21 }
 0x2e8   : > { %3496 = vmatprep.mubr.msk.f32.mxu0 %vm1114_vm0, %v1136_v59 }
 0x2eb   : > { %3497 = vmatmul.mubr.msk.f32.gmra.mrb[48].mxu0 %vm1114_vm0, %v1137_v34 }
 0x2ec   : > { %3501 = vmatprep.mubr.msk.f32.mxu0 %vm1114_vm0, %v1440_v60 }
 0x2ef   : > { %3502 = vmatmul.mubr.msk.f32.vlgmr.msra.gmra.mrb[40].mxu0 %vm1114_vm0, %v1441_v44 }
 0x2f0   : > { %3504 = vmatprep.mubr.msk.f32.mxu0 %vm1114_vm0, %v1442_v49  ;;  %3517 = vmatpush3.msra.mxu0 %v1616_v41  ;;  %v2444_v41 = vld [vmem:[#allocation2 + $0x56] sm:$0xff] }
 0x2f1   : > { %3533 = vmatprep.subr.mxu0 %v1782_v45 }
 0x2f3   : > { %3505 = vmatmul.mubr.msk.f32.gmra.mrb[42].mxu0 %vm1114_vm0, %v1443_v28 }
 0x2f4   : > { %3507 = vmatprep.mubr.msk.f32.mxu0 %vm1114_vm0, %v1444_v38 }
 0x2f7   : > { %3508 = vmatmul.mubr.msk.f32.gmra.mrb[44].mxu0 %vm1114_vm0, %v1445_v7 }
 0x2f8   : > { %3510 = vmatprep.mubr.msk.f32.mxu0 %vm1114_vm0, %v1446_v46 }
 0x2fb   : > { %3511 = vmatmul.mubr.msk.f32.gmra.mrb[46].mxu0 %vm1114_vm0, %v1447_v25 }
 0x2fc   : > { %3513 = vmatprep.mubr.msk.f32.mxu0 %vm1114_vm0, %v1448_v62 }
 0x2ff   : > { %3514 = vmatmul.mubr.msk.f32.gmra.mrb[48].mxu0 %vm1114_vm0, %v1449_v63 }
 0x300   : > { %3518 = vmatprep.mubr.msk.f32.mxu0 %vm1114_vm0, %v1441_v44 }
 0x303   : > { %3519 = vmatmul.mubr.msk.f32.vlgmr.msra.gmra.mrb[40].mxu0 %vm1114_vm0, %v1442_v49 }
 0x304   : > { %3521 = vmatprep.mubr.msk.f32.mxu0 %vm1114_vm0, %v1443_v28  ;;  %3534 = vmatpush3.msra.mxu0 %v1782_v45 }
 0x305   : > { %3550 = vmatprep.subr.mxu0 %v1948_v22 }
 0x307   : > { %3522 = vmatmul.mubr.msk.f32.gmra.mrb[42].mxu0 %vm1114_vm0, %v1444_v38 }
 0x308   : > { %3524 = vmatprep.mubr.msk.f32.mxu0 %vm1114_vm0, %v1445_v7 }
 0x30b   : > { %3525 = vmatmul.mubr.msk.f32.gmra.mrb[44].mxu0 %vm1114_vm0, %v1446_v46 }
 0x30c   : > { %3527 = vmatprep.mubr.msk.f32.mxu0 %vm1114_vm0, %v1447_v25 }
 0x30f   : > { %3528 = vmatmul.mubr.msk.f32.gmra.mrb[46].mxu0 %vm1114_vm0, %v1448_v62  ;;  %v2603_v62 = vld [vmem:[%s4852_s5 + $0x8] sm:$0xff] }
 0x310   : > { %3530 = vmatprep.mubr.msk.f32.mxu0 %vm1114_vm0, %v1449_v63  ;;  %v2604_v63 = vld [vmem:[%s4852_s5 + $0x10] sm:$0xff] }
 0x313   : > { %3531 = vmatmul.mubr.msk.f32.gmra.mrb[48].mxu0 %vm1114_vm0, %v1615_v47  ;;  %v2606_v47 = vld [vmem:[%s4852_s5 + $0x20] sm:$0xff] }
 0x314   : > { %3535 = vmatprep.mubr.msk.f32.mxu0 %vm1114_vm0, %v1772_v55  ;;  %v2607_v55 = vld [vmem:[%s4852_s5 + $0x28] sm:$0xff] }
 0x317   : > { %3536 = vmatmul.mubr.msk.f32.vlgmr.msra.gmra.mrb[40].mxu0 %vm1114_vm0, %v1773_v48  ;;  %v2608_v48 = vld [vmem:[%s4852_s5 + $0x30] sm:$0xff] }
 0x318   : > { %3538 = vmatprep.mubr.msk.f32.mxu0 %vm1114_vm0, %v1774_v29  ;;  %3551 = vmatpush3.msra.mxu0 %v1948_v22  ;;  %v2605_v22 = vld [vmem:[%s4852_s5 + $0x18] sm:$0xff]  ;;  %v2610_v29 = vld [vmem:[%s4852_s5 + $0x40] sm:$0xff] }
 0x319   : > { %3567 = vmatprep.subr.mxu0 %v2114_v32 }
 0x31b   : > { %3539 = vmatmul.mubr.msk.f32.gmra.mrb[42].mxu0 %vm1114_vm0, %v1775_v1  ;;  %v2611_v1 = vld [vmem:[%s4852_s5 + $0x48] sm:$0xff] }
 0x31c   : > { %3541 = vmatprep.mubr.msk.f32.mxu0 %vm1114_vm0, %v1776_v2  ;;  %v2612_v2 = vld [vmem:[%s4852_s5 + $0x50] sm:$0xff] }
 0x31f   : > { %3542 = vmatmul.mubr.msk.f32.gmra.mrb[44].mxu0 %vm1114_vm0, %v1777_v52  ;;  %v2613_v52 = vld [vmem:[%s4852_s5 + $0x58] sm:$0xff] }
 0x320   : > { %3544 = vmatprep.mubr.msk.f32.mxu0 %vm1114_vm0, %v1778_v58  ;;  %v2614_v58 = vld [vmem:[%s4852_s5 + $0x60] sm:$0xff] }
 0x323   : > { %3545 = vmatmul.mubr.msk.f32.gmra.mrb[46].mxu0 %vm1114_vm0, %v1779_v61  ;;  %v2615_v61 = vld [vmem:[%s4852_s5 + $0x68] sm:$0xff] }
 0x324   : > { %3547 = vmatprep.mubr.msk.f32.mxu0 %vm1114_vm0, %v1780_v0  ;;  %v2616_v0 = vld [vmem:[%s4852_s5 + $0x70] sm:$0xff] }
 0x327   : > { %3548 = vmatmul.mubr.msk.f32.gmra.mrb[48].mxu0 %vm1114_vm0, %v1781_v26  ;;  %v2617_v26 = vld [vmem:[%s4852_s5 + $0x78] sm:$0xff] }
 0x328   : > { %3552 = vmatprep.mubr.msk.f32.mxu0 %vm1114_vm0, %v1938_v33  ;;  %v2618_v33 = vld [vmem:[%s4852_s5 + $0x80] sm:$0xff] }
 0x32b   : > { %3553 = vmatmul.mubr.msk.f32.vlgmr.msra.gmra.mrb[40].mxu0 %vm1114_vm0, %v1939_v4 }
 0x32c   : > { %3555 = vmatprep.mubr.msk.f32.mxu0 %vm1114_vm0, %v1940_v50  ;;  %3568 = vmatpush3.msra.mxu0 %v2114_v32  ;;  %v2609_v32 = vld [vmem:[%s4852_s5 + $0x38] sm:$0xff] }
 0x32d   : > { %3584 = vmatprep.subr.mxu0 %v2280_v5 }
 0x32f   : > { %3556 = vmatmul.mubr.msk.f32.gmra.mrb[42].mxu0 %vm1114_vm0, %v1941_v51 }
 0x330   : > { %3558 = vmatprep.mubr.msk.f32.mxu0 %vm1114_vm0, %v1942_v3 }
 0x333   : > { %3559 = vmatmul.mubr.msk.f32.gmra.mrb[44].mxu0 %vm1114_vm0, %v1943_v36 }
 0x334   : > { %3561 = vmatprep.mubr.msk.f32.mxu0 %vm1114_vm0, %v1944_v6 }
 0x337   : > { %3562 = vmatmul.mubr.msk.f32.gmra.mrb[46].mxu0 %vm1114_vm0, %v1945_v35 }
 0x338   : > { %3564 = vmatprep.mubr.msk.f32.mxu0 %vm1114_vm0, %v1946_v8 }
 0x33b   : > { %3565 = vmatmul.mubr.msk.f32.gmra.mrb[48].mxu0 %vm1114_vm0, %v1947_v9 }
 0x33c   : > { %3569 = vmatprep.mubr.msk.f32.mxu0 %vm1114_vm0, %v1939_v4  ;;  %v2619_v4 = vld [vmem:[%s4852_s5 + $0x88] sm:$0xff] }
 0x33f   : > { %3570 = vmatmul.mubr.msk.f32.vlgmr.msra.gmra.mrb[40].mxu0 %vm1114_vm0, %v1940_v50  ;;  %v2621_v50 = vld [vmem:[%s4852_s5 + $0x98] sm:$0xff] }
 0x340   : > { %3572 = vmatprep.mubr.msk.f32.mxu0 %vm1114_vm0, %v1941_v51  ;;  %3585 = vmatpush3.msra.mxu0 %v2280_v5  ;;  %v2620_v5 = vld [vmem:[%s4852_s5 + $0x90] sm:$0xff] }
 0x341   : > { %3601 = vmatprep.subr.mxu0 %v2446_v13 }
 0x343   : > { %3573 = vmatmul.mubr.msk.f32.gmra.mrb[42].mxu0 %vm1114_vm0, %v1942_v3 }
 0x344   : > { %3575 = vmatprep.mubr.msk.f32.mxu0 %vm1114_vm0, %v1943_v36 }
 0x347   : > { %3576 = vmatmul.mubr.msk.f32.gmra.mrb[44].mxu0 %vm1114_vm0, %v1944_v6 }
 0x348   : > { %3578 = vmatprep.mubr.msk.f32.mxu0 %vm1114_vm0, %v1945_v35 }
 0x34b   : > { %3579 = vmatmul.mubr.msk.f32.gmra.mrb[46].mxu0 %vm1114_vm0, %v1946_v8 }
 0x34c   : > { %3581 = vmatprep.mubr.msk.f32.mxu0 %vm1114_vm0, %v1947_v9 }
 0x34f   : > { %3582 = vmatmul.mubr.msk.f32.gmra.mrb[48].mxu0 %vm1114_vm0, %v2113_v23 }
 0x350   : > { %3586 = vmatprep.mubr.msk.f32.mxu0 %vm1114_vm0, %v2270_v10 }
 0x353   : > { %3587 = vmatmul.mubr.msk.f32.vlgmr.msra.gmra.mrb[40].mxu0 %vm1114_vm0, %v2271_v31 }
 0x354   : > { %3589 = vmatprep.mubr.msk.f32.mxu0 %vm1114_vm0, %v2272_v30  ;;  %3602 = vmatpush3.msra.mxu0 %v2446_v13 }
 0x357   : > { %3590 = vmatmul.mubr.msk.f32.gmra.mrb[42].mxu0 %vm1114_vm0, %v2273_v37 }
 0x358   : > { %3592 = vmatprep.mubr.msk.f32.mxu0 %vm1114_vm0, %v2274_v11 }
 0x35b   : > { %3593 = vmatmul.mubr.msk.f32.gmra.mrb[44].mxu0 %vm1114_vm0, %v2275_v12 }
 0x35c   : > { %3595 = vmatprep.mubr.msk.f32.mxu0 %vm1114_vm0, %v2276_v53 }
 0x35f   : > { %3596 = vmatmul.mubr.msk.f32.gmra.mrb[46].mxu0 %vm1114_vm0, %v2277_v54 }
 0x360   : > { %3598 = vmatprep.mubr.msk.f32.mxu0 %vm1114_vm0, %v2278_v16 }
 0x363   : > { %3599 = vmatmul.mubr.msk.f32.gmra.mrb[48].mxu0 %vm1114_vm0, %v2279_v40 }
 0x364   : > { %3603 = vmatprep.mubr.msk.f32.mxu0 %vm1114_vm0, %v2436_v24 }
 0x367   : > { %3604 = vmatmul.mubr.msk.f32.vlgmr.msra.gmra.mrb[40].mxu0 %vm1114_vm0, %v2437_v39 }
 0x368   : > { %3606 = vmatprep.mubr.msk.f32.mxu0 %vm1114_vm0, %v2438_v14 }
 0x36b   : > { %3607 = vmatmul.mubr.msk.f32.gmra.mrb[42].mxu0 %vm1114_vm0, %v2439_v15  ;;  %v2863_v15 = vld [vmem:[%s4853_s6] sm:$0xff] }
 0x36c   : > { %3609 = vmatprep.mubr.msk.f32.mxu0 %vm1114_vm0, %v2440_v17 }
 0x36f   : > { %3610 = vmatmul.mubr.msk.f32.gmra.mrb[44].mxu0 %vm1114_vm0, %v2441_v27 }
 0x370   : > { %3612 = vmatprep.mubr.msk.f32.mxu0 %vm1114_vm0, %v2442_v56 }
 0x373   : > { %3613 = vmatmul.mubr.msk.f32.gmra.mrb[46].mxu0 %vm1114_vm0, %v2443_v57 }
 0x374   : > { %3615 = vmatprep.mubr.msk.f32.mxu0 %vm1114_vm0, %v2444_v41 }
 0x377   : > { %3616 = vmatmul.mubr.msk.f32.gmra.mrb[48].mxu0 %vm1114_vm0, %v2445_v19  ;;  %v2865_v19 = vld [vmem:[%s4853_s6 + $0x10] sm:$0xff] }
 0x43a   : > { %v3605_v43 = vpop.f32.mrb[40].mxu0 }
 0x43b   : > { %v2543_v42 = vpop.f32.mrb[41].mxu0 }
 0x43c   : > { %v3748_v18 = vpack.c.bf16 %v3605_v43, %v2543_v42 }
 0x43e   : > { %v3608_v21 = vpop.f32.mrb[42].mxu0  ;;  %3749 = vmatprep.subr.bf16.mxu1 %v3748_v18 }
 0x43f   : > { %v2553_v59 = vpop.f32.mrb[43].mxu0  ;;  %3751 = vmatpush3.bf16.msra.mxu1 %v3748_v18  ;;  %v2864_v18 = vld [vmem:[%s4853_s6 + $0x8] sm:$0xff] }
 0x440   : > { %v3752_v34 = vpack.c.bf16 %v3608_v21, %v2553_v59 }
 0x442   : > { %v3611_v60 = vpop.f32.mrb[44].mxu0  ;;  %3753 = vmatprep.subr.bf16.mxu1 %v3752_v34 }
 0x443   : > { %v2563_v44 = vpop.f32.mrb[45].mxu0  ;;  %3755 = vmatpush3.bf16.msra.mxu1 %v3752_v34 }
 0x444   : > { %v3756_v45 = vpack.c.bf16 %v3611_v60, %v2563_v44 }
 0x446   : > { %v3614_v49 = vpop.f32.mrb[46].mxu0  ;;  %3757 = vmatprep.subr.bf16.mxu1 %v3756_v45 }
 0x447   : > { %v2573_v28 = vpop.f32.mrb[47].mxu0  ;;  %3759 = vmatpush3.bf16.msra.mxu1 %v3756_v45 }
 0x448   : > { %v3760_v38 = vpack.c.bf16 %v3614_v49, %v2573_v28  ;;  %v2867_v49 = vld [vmem:[%s4853_s6 + $0x20] sm:$0xff] }
 0x44a   : > { %v3617_v7 = vpop.f32.mrb[48].mxu0  ;;  %3761 = vmatprep.subr.bf16.mxu1 %v3760_v38 }
 0x44b   : > { %v2583_v46 = vpop.f32.mrb[49].mxu0  ;;  %3763 = vmatpush3.bf16.msra.mxu1 %v3760_v38 }
 0x44c   : > { %v3764_v25 = vpack.c.bf16 %v3617_v7, %v2583_v46  ;;  %v2866_v46 = vld [vmem:[%s4853_s6 + $0x18] sm:$0xff] }
 0x44e   : > { %3765 = vmatprep.subr.bf16.mxu1 %v3764_v25 }
 0x44f   : > { %3767 = vmatpush3.bf16.msra.mxu1 %v3764_v25 }
 0x452   : > { %3639 = vmatmul.mubr.msk.f32.vlgmr.msra.gmra.mrb[96].mxu1 %vm2622_vm1, %v2603_v62 }
 0x453   : > { %3641 = vmatprep.mubr.msk.f32.mxu1 %vm2622_vm1, %v2604_v63 }
 0x456   : > { %3642 = vmatmul.mubr.msk.f32.gmra.mrb[98].mxu1 %vm2622_vm1, %v2605_v22 }
 0x457   : > { %3644 = vmatprep.mubr.msk.f32.mxu1 %vm2622_vm1, %v2606_v47 }
 0x45a   : > { %3645 = vmatmul.mubr.msk.f32.gmra.mrb[100].mxu1 %vm2622_vm1, %v2607_v55 }
 0x45b   : > { %3647 = vmatprep.mubr.msk.f32.mxu1 %vm2622_vm1, %v2608_v48 }
 0x45e   : > { %3648 = vmatmul.mubr.msk.f32.gmra.mrb[102].mxu1 %vm2622_vm1, %v2609_v32  ;;  %v3196_v32 = vld [vmem:[%s4854_s7] ss:$0 sm:$0xff] }
 0x45f   : > { %3650 = vmatprep.mubr.msk.f32.mxu1 %vm2622_vm1, %v2610_v29  ;;  %v3197_v29 = vld [vmem:[%s4854_s7 + $0x1] ss:$0 sm:$0xff] }
 0x462   : > { %3651 = vmatmul.mubr.msk.f32.gmra.mrb[104].mxu1 %vm2622_vm1, %v2611_v1  ;;  %v3198_v1 = vld [vmem:[%s4854_s7 + $0x2] ss:$0 sm:$0xff] }
 0x463   : > { %3653 = vmatprep.mubr.msk.f32.mxu1 %vm2622_vm1, %v2612_v2 }
 0x466   : > { %3654 = vmatmul.mubr.msk.f32.gmra.mrb[106].mxu1 %vm2622_vm1, %v2613_v52 }
 0x467   : > { %3656 = vmatprep.mubr.msk.f32.mxu1 %vm2622_vm1, %v2614_v58 }
 0x46a   : > { %3657 = vmatmul.mubr.msk.f32.gmra.mrb[108].mxu1 %vm2622_vm1, %v2615_v61 }
 0x46b   : > { %3659 = vmatprep.mubr.msk.f32.mxu1 %vm2622_vm1, %v2616_v0 }
 0x46e   : > { %3660 = vmatmul.mubr.msk.f32.gmra.mrb[110].mxu1 %vm2622_vm1, %v2617_v26 }
 0x46f   : > { %3662 = vmatprep.mubr.msk.f32.mxu1 %vm2622_vm1, %v2618_v33 }
 0x472   : > { %3663 = vmatmul.mubr.msk.f32.gmra.mrb[112].mxu1 %vm2622_vm1, %v2619_v4 }
 0x473   : > { %3665 = vmatprep.mubr.msk.f32.mxu1 %vm2622_vm1, %v2620_v5 }
 0x476   : > { %3666 = vmatmul.mubr.msk.f32.gmra.mrb[114].mxu1 %vm2622_vm1, %v2621_v50 }
 0x525   : > { %v3640_v51 = vpop.f32.mrb[96].mxu1 }
 0x526   : > { %v2749_v3 = vpop.f32.mrb[97].mxu1 }
 0x529   : > { %v3643_v36 = vpop.f32.mrb[98].mxu1 }
 0x52a   : > { %v2759_v6 = vpop.f32.mrb[99].mxu1 }
 0x52d   : > { %v3646_v35 = vpop.f32.mrb[100].mxu1 }
 0x52e   : > { %v2848_v8 = vmax.f32 %v2749_v3, %v3646_v35  ;;  %v2769_v9 = vpop.f32.mrb[101].mxu1 }
 0x531   : > { %v3649_v13 = vpop.f32.mrb[102].mxu1 }
 0x532   : > { %v2850_v23 = vmax.f32 %v2759_v6, %v3649_v13  ;;  %v2779_v10 = vpop.f32.mrb[103].mxu1  ;;  %v3200_v13 = vld [vmem:[%s4854_s7 + $0x4] ss:$0 sm:$0xff] }
 0x533   : > { %v2849_v31 = vmax.f32 %v3640_v51, %v2779_v10  ;;  %v3199_v51 = vld [vmem:[%s4854_s7 + $0x3] ss:$0 sm:$0xff] }
 0x535   : > { %v3652_v30 = vpop.f32.mrb[104].mxu1 }
 0x536   : > { %v2852_v37 = vmax.f32 %v2769_v9, %v3652_v30  ;;  %v2789_v11 = vpop.f32.mrb[105].mxu1 }
 0x537   : > { %v2851_v12 = vmax.f32 %v3643_v36, %v2789_v11 }
 0x539   : > { %v3655_v53 = vpop.f32.mrb[106].mxu1 }
 0x53a   : > { %v2799_v54 = vpop.f32.mrb[107].mxu1 }
 0x53d   : > { %v3658_v16 = vpop.f32.mrb[108].mxu1 }
 0x53e   : > { %v2809_v40 = vpop.f32.mrb[109].mxu1 }
 0x541   : > { %v3661_v24 = vpop.f32.mrb[110].mxu1 }
 0x542   : > { %v2853_v39 = vmax.f32 %v2799_v54, %v3661_v24  ;;  %v2819_v14 = vpop.f32.mrb[111].mxu1 }
 0x544   : > { %v2858_v17 = vmax.f32 %v2848_v8, %v2853_v39 }
 0x545   : > { %v3664_v27 = vpop.f32.mrb[112].mxu1 }
 0x546   : > { %v2868_v56 = vadd.f32 %v2863_v15, %v2858_v17  ;;  %v2855_v57 = vmax.f32 %v2809_v40, %v3664_v27  ;;  %v2829_v41 = vpop.f32.mrb[113].mxu1  ;;  %v3202_v27 = vld [vmem:[%s4854_s7 + $0x6] ss:$0 sm:$0xff] }
 0x547   : > { %v2854_v20 = vmax.f32 %v3655_v53, %v2829_v41  ;;  %v3201_v53 = vld [vmem:[%s4854_s7 + $0x5] ss:$0 sm:$0xff] }
 0x548   : > { %v2873_v43 = vmax.f32 %v2868_v56, 0.0  ;;  %v2860_v42 = vmax.f32 %v2850_v23, %v2855_v57 }
 0x549   : > { %v2859_v21 = vmax.f32 %v2849_v31, %v2854_v20  ;;  %v3667_v59 = vpop.f32.mrb[114].mxu1 }
 0x54a   : > { %2878 = vst.msk [vmem:[#allocation3] sm:$0xff] %vm1114_vm0, %v2873_v43  ;;  %v2870_v34 = vadd.f32 %v2865_v19, %v2860_v42  ;;  %v2857_v60 = vmax.f32 %v2819_v14, %v3667_v59  ;;  %v2839_v44 = vpop.f32.mrb[115].mxu1 }
 0x54b   : > { %v2869_v45 = vadd.f32 %v2864_v18, %v2859_v21  ;;  %v2856_v28 = vmax.f32 %v3658_v16, %v2839_v44  ;;  %v3203_v21 = vld [vmem:[%s4854_s7 + $0x7] ss:$0 sm:$0xff] }
 0x54c   : > { %v2875_v38 = vmax.f32 %v2870_v34, 0.0  ;;  %v2862_v7 = vmax.f32 %v2852_v37, %v2857_v60 }
 0x54d   : > { %v2874_v25 = vmax.f32 %v2869_v45, 0.0  ;;  %v2861_v62 = vmax.f32 %v2851_v12, %v2856_v28 }
 0x54e   : > { %2880 = vst.msk [vmem:[#allocation3 + $0x10] sm:$0xff] %vm1114_vm0, %v2875_v38  ;;  %v2872_v63 = vadd.f32 %v2867_v49, %v2862_v7  ;;  %v3204_v7 = vld [vmem:[%s4854_s7 + $0x8] ss:$0 sm:$0xff] }
 0x54f   : > { %2879 = vst.msk [vmem:[#allocation3 + $0x8] sm:$0xff] %vm1114_vm0, %v2874_v25  ;;  %v2871_v22 = vadd.f32 %v2866_v46, %v2861_v62 }
 0x550   : > { %v2877_v47 = vmax.f32 %v2872_v63, 0.0 }
 0x551   : > { %v2876_v55 = vmax.f32 %v2871_v22, 0.0  ;;  %v2883_v48 = vld [vmem:[#allocation3] sm:$0xff] }
 0x552   : > { %2882 = vst.msk [vmem:[#allocation3 + $0x20] sm:$0xff] %vm1114_vm0, %v2877_v47  ;;  %v2891_v61 = vmul.f32 %v3196_v32, %v2883_v48 }
 0x553   : > { %2881 = vst.msk [vmem:[#allocation3 + $0x18] sm:$0xff] %vm1114_vm0, %v2876_v55 }
 0x555   : > { %v2885_v35 = vld [vmem:[#allocation3 + $0x10] sm:$0xff] }
 0x556   : > { %v2884_v2 = vld [vmem:[#allocation3 + $0x8] sm:$0xff]  ;;  %v2893_v16 = vmul.f32 %v3196_v32, %v2885_v35  ;;  %v2957_v34 = vmul.f32 %v3201_v53, %v2885_v35 }
 0x557   : > { %v2894_v52 = vld [vmem:[#allocation3 + $0x1] sm:$0xff]  ;;  %v2895_v58 = vld [vmem:[#allocation3 + $0x9] sm:$0xff]  ;;  %v2892_v5 = vmul.f32 %v3196_v32, %v2884_v2  ;;  %v2956_v20 = vmul.f32 %v3201_v53, %v2884_v2 }
 0x558   : > { %v2902_v0 = vmul.f32 %v3197_v29, %v2894_v52  ;;  %v2903_v26 = vmul.f32 %v3197_v29, %v2895_v58  ;;  %v2908_v33 = vld [vmem:[#allocation3 + $0x2] sm:$0xff]  ;;  %v2909_v4 = vld [vmem:[#allocation3 + $0xa] sm:$0xff] }
 0x559   : > { %v2922_v50 = vld [vmem:[#allocation3 + $0x6] sm:$0xff]  ;;  %v2916_v36 = vmul.f32 %v3198_v1, %v2908_v33  ;;  %v2923_v6 = vld [vmem:[#allocation3 + $0xe] sm:$0xff]  ;;  %v2917_v8 = vmul.f32 %v3198_v1, %v2909_v4 }
 0x55a   : > { %v2905_v3 = vadd.f32 %v2902_v0, %v2891_v61  ;;  %v2936_v9 = vld [vmem:[#allocation3 + $0x7] sm:$0xff]  ;;  %v2906_v23 = vadd.f32 %v2903_v26, %v2892_v5  ;;  %v2930_v31 = vmul.f32 %v3199_v51, %v2922_v50  ;;  %v2937_v30 = vld [vmem:[#allocation3 + $0xf] sm:$0xff]  ;;  %v2931_v12 = vmul.f32 %v3199_v51, %v2923_v6  ;;  %v2938_v42 = vld [vmem:[#allocation3 + $0x17] sm:$0xff] }
 0x55b   : > { %v2896_v37 = vld [vmem:[#allocation3 + $0x11] sm:$0xff]  ;;  %v2944_v39 = vmul.f32 %v3200_v13, %v2936_v9  ;;  %v2945_v15 = vmul.f32 %v3200_v13, %v2937_v30  ;;  %v2946_v63 = vmul.f32 %v3200_v13, %v2938_v42  ;;  %v2964_v55 = vld [vmem:[#allocation3 + $0x1c] sm:$0xff]  ;;  %v2996_v52 = vmul.f32 %v3204_v7, %v2923_v6 }
 0x55c   : > { %v2919_v10 = vadd.f32 %v2916_v36, %v2905_v3  ;;  %v2910_v11 = vld [vmem:[#allocation3 + $0x12] sm:$0xff]  ;;  %v2920_v54 = vadd.f32 %v2917_v8, %v2906_v23  ;;  %v2904_v40 = vmul.f32 %v3197_v29, %v2896_v37  ;;  %v2978_v58 = vld [vmem:[#allocation3 + $0x1d] sm:$0xff]  ;;  %v2972_v26 = vmul.f32 %v3202_v27, %v2964_v55 }
 0x55d   : > { %v2924_v14 = vld [vmem:[#allocation3 + $0x16] sm:$0xff]  ;;  %v2962_v17 = vld [vmem:[#allocation3 + $0xc] sm:$0xff]  ;;  %v2918_v41 = vmul.f32 %v3198_v1, %v2910_v11  ;;  %v2990_v5 = vld [vmem:[#allocation3 + $0x1e] sm:$0xff]  ;;  %v3012_v23 = vstv %s3011_s29 }
 0x55e   : > { %v2933_v24 = vadd.f32 %v2930_v31, %v2919_v10  ;;  %v2934_v56 = vadd.f32 %v2931_v12, %v2920_v54  ;;  %v2907_v57 = vadd.f32 %v2904_v40, %v2893_v16  ;;  %v2963_v43 = vld [vmem:[#allocation3 + $0x14] sm:$0xff]  ;;  %v2932_v44 = vmul.f32 %v3199_v51, %v2924_v14 }
 0x55f   : > { %v2976_v18 = vld [vmem:[#allocation3 + $0xd] sm:$0xff]  ;;  %v2970_v49 = vmul.f32 %v3202_v27, %v2962_v17  ;;  %v2977_v28 = vld [vmem:[#allocation3 + $0x15] sm:$0xff]  ;;  %v2971_v25 = vmul.f32 %v3202_v27, %v2963_v43  ;;  %v2997_v4 = vmul.f32 %v3204_v7, %v2924_v14  ;;  %v2986_v51 = vmul.f32 %v3203_v21, %v2978_v58 }
 0x560   : > { %v2947_v19 = vadd.f32 %v2944_v39, %v2933_v24  ;;  %v2948_v59 = vadd.f32 %v2945_v15, %v2934_v56  ;;  %v2921_v60 = vadd.f32 %v2918_v41, %v2907_v57  ;;  %v2950_v38 = vld [vmem:[#allocation3 + $0x18] sm:$0xff]  ;;  %v2984_v47 = vmul.f32 %v3203_v21, %v2976_v18 }
 0x561   : > { %v2985_v32 = vmul.f32 %v3203_v21, %v2977_v28  ;;  %v2958_v1 = vmul.f32 %v3201_v53, %v2950_v38  ;;  %v2998_v8 = vmul.f32 %v3204_v7, %v2990_v5 }
 0x562   : > { %v2959_v45 = vadd.f32 %v2956_v20, %v2947_v19  ;;  %v2960_v46 = vadd.f32 %v2957_v34, %v2948_v59  ;;  %v2935_v62 = vadd.f32 %v2932_v44, %v2921_v60 }
 0x564   : > { %v2973_v22 = vadd.f32 %v2970_v49, %v2959_v45  ;;  %v2974_v48 = vadd.f32 %v2971_v25, %v2960_v46  ;;  %v2949_v29 = vadd.f32 %v2946_v63, %v2935_v62 }
 0x566   : > { %v2987_v2 = vadd.f32 %v2984_v47, %v2973_v22  ;;  %v2988_v61 = vadd.f32 %v2985_v32, %v2974_v48  ;;  %v2961_v0 = vadd.f32 %v2958_v1, %v2949_v29 }
 0x568   : > { %v2999_v33 = vadd.f32 %v2996_v52, %v2987_v2  ;;  %v2975_v50 = vadd.f32 %v2972_v26, %v2961_v0  ;;  %v3000_v36 = vadd.f32 %v2997_v4, %v2988_v61 }
 0x56a   : > { %v3002_v3 = vsel %vm1114_vm0, %v2999_v33, 0.0  ;;  %v2989_v35 = vadd.f32 %v2986_v51, %v2975_v50  ;;  %v3005_v13 = vsel %vm1114_vm0, %v3000_v36, 0.0 }
 0x56b   : > { %3003 = vadd.xlane.f32.xlu0 %v3002_v3 }
 0x56c   : > { %v3001_v9 = vadd.f32 %v2998_v8, %v2989_v35 }
 0x56e   : > { %v3008_v6 = vsel %vm1114_vm0, %v3001_v9, 0.0 }
 0x56f   : > { %3006 = vadd.xlane.f32.xlu0 %v3005_v13  ;;  %3009 = vadd.xlane.f32.xlu1 %v3008_v6 }
 0x5f8   : > { %v3004_v10 = vpop.xlane.xlu0 %3003 }
 0x5f9   : > { %v3013_v31 = vadd.f32 %v3012_v23, %v3004_v10 }
 0x5fb   : > { %v3016_v30 = vmax.f32 %v3013_v31, 0.0 }
 0x5fc   : > { %v3007_v37 = vpop.xlane.xlu0 %3006  ;;  %v3010_v12 = vpop.xlane.xlu1 %3009 }
 0x5fd   : > { %3020 = vst.msk [vmem:[%s333_s27] sm:$0xff] %vm3019_vm2, %v3016_v30  ;;  %v3014_v11 = vadd.f32 %v3012_v23, %v3007_v37  ;;  %v3015_v53 = vadd.f32 %v3012_v23, %v3010_v12 }
 0x5ff   : > { %v3017_v54 = vmax.f32 %v3014_v11, 0.0  ;;  %v3018_v16 = vmax.f32 %v3015_v53, 0.0 }
 0x601   : > { %3021 = vst.msk [vmem:[%s333_s27 + $0x8] sm:$0xff] %vm3019_vm2, %v3017_v54  ;;  %3022 = vst.msk [vmem:[%s333_s27 + $0x10] sm:$0xff] %vm3019_vm2, %v3018_v16 }
 0x602 PF: > { %s20_s11 = sadd.s32 1, %s3896_s11  }
 0x603   : > { %p17_p4 = scmp.ge.s32.totalorder %s20_s11, 4  }
 0x605   :  { %19 = sbr.rel (!%p17_p4) target bundleno = 2 (0x2), region = 86 }

</bundles_post_ra>
